<compile_context>
chip_gen: v7x
topology: tpu7x:2x2x1
jax: 0.10.0
libtpu: 0.0.40
codegen_flags: <defaults>
</compile_context>

<pallas_src>
import functools
import math
from dataclasses import dataclass

import jax
import jax.numpy as jnp
from jax.experimental import pallas as pl
from jax.experimental.pallas import tpu as pltpu


# ---------------------------------------------------------------------------
# Pallas kernel: masked scaled-dot-product attention
# ---------------------------------------------------------------------------

def _sdpa_kernel(q_ref, k_ref, v_ref, bias_ref, ctx_ref, prob_ref, *,
                 scale, heads_per_block, d_head):
    """One (batch, head-chunk, q-tile) grid step.

    q_ref   : (1, TQ, HB*D)   bf16   query tile, heads packed along lanes
    k_ref   : (1, S,  HB*D)   bf16   full keys for this head-chunk (resident)
    v_ref   : (1, S,  HB*D)   bf16   full values for this head-chunk
    bias_ref: (1, 1, S)       f32    0 for valid keys / -1e9 for pad keys
    ctx_ref : (1, TQ, HB*D)   f32
    prob_ref: (1, HB, TQ, S)  bf16 (or f32)
    """
    bias = bias_ref[0]                          # (1, S): broadcasts over rows
    for h in range(heads_per_block):            # static unroll; HB is small
        lo = h * d_head
        hi = lo + d_head
        q = q_ref[0, :, lo:hi] * scale          # fold 1/sqrt(d_head) into Q
        k = k_ref[0, :, lo:hi]
        v = v_ref[0, :, lo:hi]

        # scores = Q @ K^T: contract the D axes directly (no XLU K transpose).
        scores = jax.lax.dot_general(
            q, k, dimension_numbers=(((1,), (1,)), ((), ())),
            preferred_element_type=jnp.float32)          # (TQ, S) f32
        # masked_fill(pad, -1e9) expressed as an additive key bias.
        scores = scores + bias

        # Numerically stable softmax over keys; reciprocal goes to the EUP.
        row_max = jnp.max(scores, axis=-1, keepdims=True)
        exp_s = jnp.exp(scores - row_max)
        denom = jnp.sum(exp_s, axis=-1, keepdims=True)
        prob = (exp_s * pl.reciprocal(denom, approx=True)).astype(prob_ref.dtype)

        # TODO(synk): training-mode dropout on attn_prob would use
        # pltpu.prng_seed / pltpu.prng_random_bits; eval dropout is identity.

        prob_ref[0, h] = prob
        ctx_ref[0, :, lo:hi] = jnp.dot(
            prob.astype(v.dtype), v,
            preferred_element_type=jnp.float32).astype(ctx_ref.dtype)


# ---------------------------------------------------------------------------
# Generation-aware tiling / VMEM helpers
# ---------------------------------------------------------------------------

def _vmem_capacity_bytes():
    cap = 128 * 1024 * 1024
    try:
        info = pltpu.get_tpu_info()
        cap = int(getattr(info, "vmem_capacity_bytes", cap) or cap)
    except Exception:
        pass
    return cap


def _vmem_limit_bytes(cap):
    # Never request the full physical VMEM: leave headroom for internal
    # scratch / semaphores / double-buffered I/O windows (v7x has only 64 MiB).
    if cap <= 64 * 1024 * 1024:
        return min(cap, 48 * 1024 * 1024)
    return 64 * 1024 * 1024


def _pick_q_tile(s_pad, vmem_cap):
    """Query-tile rows.  s_pad is already a multiple of 128."""
    if s_pad <= 256:
        return s_pad
    tq = 256
    if vmem_cap <= 64 * 1024 * 1024 and s_pad >= 4096:
        tq = 128           # v7x: halve the (TQ, S) working set
    while s_pad % tq != 0:
        tq -= 128          # terminates at 128 (s_pad is a multiple of 128)
    return tq


def _pick_heads_per_block(n_head, s_pad, q_tile, d_head, vmem_cap, prob_bytes):
    """How many heads to fuse per grid step, bounded by a rough VMEM estimate."""
    kv_in = 2 * 2 * s_pad * d_head * 2           # K+V bf16, double-buffered
    q_in = 2 * q_tile * d_head * 2
    prob_out = 2 * q_tile * s_pad * prob_bytes   # double-buffered output window
    ctx_out = 2 * q_tile * d_head * 4
    interm = 2 * q_tile * s_pad * 4              # live f32 scores/exp
    per_head = kv_in + q_in + prob_out + ctx_out + interm
    budget = int(0.6 * vmem_cap)
    hb = max(1, min(n_head, budget // max(per_head, 1)))
    while n_head % hb != 0:
        hb -= 1
    return hb


# ---------------------------------------------------------------------------
# Attention wrapper
# ---------------------------------------------------------------------------

def scaled_dot_product_attention(q, k, v, key_pad_mask, *, d_head,
                                 q_tile=None, heads_per_block=None,
                                 mxu_dtype=jnp.bfloat16,
                                 prob_dtype=jnp.bfloat16):
    """Pallas masked attention.

    q, k, v      : [B, S, H, D] float (projection layout, no head transpose)
    key_pad_mask : [B, S] bool, True == key position is padding (masked)
    Returns (context [B,S,H,D] f32, attn_prob [B,H,S,S] prob_dtype), matching
    ScaledDotProductAttention.forward in eval mode.
    """
    B, S, H, D = q.shape
    assert k.shape == (B, S, H, D) and v.shape == (B, S, H, D)
    assert key_pad_mask.shape == (B, S)
    assert D == d_head

    cap = _vmem_capacity_bytes()
    S_pad = ((S + 127) // 128) * 128
    pad = S_pad - S
    if q_tile is None:
        q_tile = _pick_q_tile(S_pad, cap)
    assert S_pad % q_tile == 0
    if heads_per_block is None:
        heads_per_block = _pick_heads_per_block(
            H, S_pad, q_tile, D, cap, jnp.dtype(prob_dtype).itemsize)
    HB = heads_per_block
    assert H % HB == 0

    scale = 1.0 / math.sqrt(d_head)

    def prep(x):
        x = x.astype(mxu_dtype).reshape(B, S, H * D)
        if pad:
            x = jnp.pad(x, ((0, 0), (0, pad), (0, 0)))
        return x

    qf, kf, vf = prep(q), prep(k), prep(v)

    # Pad mask depends only on (batch, key): stream a single (B, 1, S_pad)
    # additive bias (0 / -1e9) instead of a dense (B, H, S, S) mask; padded
    # key positions are masked with -1e9 as well.
    bias = jnp.where(key_pad_mask, jnp.float32(-1.0e9), jnp.float32(0.0))
    if pad:
        bias = jnp.pad(bias, ((0, 0), (0, pad)), constant_values=-1.0e9)
    bias = bias.reshape(B, 1, S_pad)

    grid = (B, H // HB, S_pad // q_tile)
    kernel = functools.partial(_sdpa_kernel, scale=scale,
                               heads_per_block=HB, d_head=D)

    ctx, prob = pl.pallas_call(
        kernel,
        out_shape=(
            jax.ShapeDtypeStruct((B, S_pad, H * D), jnp.float32),
            jax.ShapeDtypeStruct((B, H, S_pad, S_pad), prob_dtype),
        ),
        grid=grid,
        in_specs=[
            pl.BlockSpec((1, q_tile, HB * D), lambda b, hi, qi: (b, qi, hi)),
            pl.BlockSpec((1, S_pad, HB * D), lambda b, hi, qi: (b, 0, hi)),
            pl.BlockSpec((1, S_pad, HB * D), lambda b, hi, qi: (b, 0, hi)),
            pl.BlockSpec((1, 1, S_pad), lambda b, hi, qi: (b, 0, 0)),
        ],
        out_specs=(
            pl.BlockSpec((1, q_tile, HB * D), lambda b, hi, qi: (b, qi, hi)),
            pl.BlockSpec((1, HB, q_tile, S_pad),
                         lambda b, hi, qi: (b, hi, qi, 0)),
        ),
        compiler_params=pltpu.CompilerParams(
            dimension_semantics=("parallel", "parallel", "parallel"),
            vmem_limit_bytes=_vmem_limit_bytes(cap)),
    )(qf, kf, vf, bias)

    ctx = ctx[:, :S].reshape(B, S, H, D)
    prob = prob[:, :, :S, :S]
    return ctx, prob


def _sdpa_reference(q, k, v, key_pad_mask, *, d_head, mxu_dtype=jnp.float32):
    """Plain-JAX attention with the same math (optionally bf16 MXU operands).

    q, k, v: [B, S, H, D].  Returns ctx [B,S,H,D] f32, prob [B,H,S,S] f32.
    """
    scale = 1.0 / math.sqrt(d_head)
    qs = q.astype(mxu_dtype) * jnp.asarray(scale, dtype=mxu_dtype)
    ks = k.astype(mxu_dtype)
    vs = v.astype(mxu_dtype)
    scores = jnp.einsum("bqhd,bkhd->bhqk", qs, ks,
                        preferred_element_type=jnp.float32)
    scores = jnp.where(key_pad_mask[:, None, None, :],
                       jnp.float32(-1.0e9), scores)
    prob = jax.nn.softmax(scores, axis=-1)
    ctx = jnp.einsum("bhqk,bkhd->bqhd", prob.astype(mxu_dtype), vs,
                     preferred_element_type=jnp.float32)
    return ctx, prob


# ---------------------------------------------------------------------------
# Encoder (projections / LayerNorm / FFN in plain JAX, attention in Pallas)
# ---------------------------------------------------------------------------

@dataclass(frozen=True)
class EncoderConfig:
    n_enc_seq: int = 15          # tokens; CLS is prepended -> S = 16
    d_hidn: int = 32
    n_head: int = 2
    d_head: int = 128            # lane-dense head dim (multiple of 128)
    d_ff: int = 64
    n_layer: int = 2
    i_pad: int = 0
    dropout: float = 0.0         # eval mode -> identity
    emb_dropout: float = 0.0     # eval mode -> identity
    layer_norm_epsilon: float = 1e-6


def _dense_params(key, fan_in, fan_out):
    kw, kb = jax.random.split(key)
    w = jax.random.normal(kw, (fan_in, fan_out), jnp.float32) / math.sqrt(fan_in)
    b = 0.01 * jax.random.normal(kb, (fan_out,), jnp.float32)
    return {"w": w, "b": b}


def init_encoder_params(key, cfg):
    k_cls, k_pos, *k_layers = jax.random.split(key, 2 + cfg.n_layer)
    layers = []
    for kl in k_layers:
        kq, kk, kv, ko, k1, k2 = jax.random.split(kl, 6)
        layers.append({
            "W_Q": _dense_params(kq, cfg.d_hidn, cfg.n_head * cfg.d_head),
            "W_K": _dense_params(kk, cfg.d_hidn, cfg.n_head * cfg.d_head),
            "W_V": _dense_params(kv, cfg.d_hidn, cfg.n_head * cfg.d_head),
            "W_O": _dense_params(ko, cfg.n_head * cfg.d_head, cfg.d_hidn),
            "ffn1": _dense_params(k1, cfg.d_hidn, cfg.d_ff),
            "ffn2": _dense_params(k2, cfg.d_ff, cfg.d_hidn),
            "ln1_g": jnp.ones((cfg.d_hidn,), jnp.float32),
            "ln1_b": jnp.zeros((cfg.d_hidn,), jnp.float32),
            "ln2_g": jnp.ones((cfg.d_hidn,), jnp.float32),
            "ln2_b": jnp.zeros((cfg.d_hidn,), jnp.float32),
        })
    return {
        "cls_token": jax.random.normal(k_cls, (1, 1, cfg.d_hidn), jnp.float32),
        "pos_embedding": jax.random.normal(
            k_pos, (1, cfg.n_enc_seq + 1, cfg.d_hidn), jnp.float32),
        "layers": layers,
    }


def _dense(x, p):
    return x @ p["w"] + p["b"]


def _layer_norm(x, g, b, eps):
    mu = jnp.mean(x, axis=-1, keepdims=True)
    var = jnp.mean(jnp.square(x - mu), axis=-1, keepdims=True)
    return (x - mu) * jax.lax.rsqrt(var + eps) * g + b


def _multi_head_attention(lp, cfg, x, key_pad_mask, sdpa_fn):
    B, S, _ = x.shape
    H, Dh = cfg.n_head, cfg.d_head
    # No (0,2,1,3) transposes: keep the (B, S, H, D) projection layout; the
    # kernel's BlockSpec index_map selects head chunks along the lane axis.
    q = _dense(x, lp["W_Q"]).reshape(B, S, H, Dh)
    k = _dense(x, lp["W_K"]).reshape(B, S, H, Dh)
    v = _dense(x, lp["W_V"]).reshape(B, S, H, Dh)
    ctx, prob = sdpa_fn(q, k, v, key_pad_mask, d_head=Dh)
    ctx = ctx.reshape(B, S, H * Dh)           # already in output-proj layout
    out = _dense(ctx, lp["W_O"])              # output projection (dropout: eval)
    return out, prob


def _encoder_layer(lp, cfg, x, key_pad_mask, sdpa_fn):
    att, prob = _multi_head_attention(lp, cfg, x, key_pad_mask, sdpa_fn)
    att = _layer_norm(x + att, lp["ln1_g"], lp["ln1_b"], cfg.layer_norm_epsilon)
    h = jax.nn.gelu(_dense(att, lp["ffn1"]), approximate=False)
    ffn = _dense(h, lp["ffn2"])               # 1x1 convs == dense layers
    out = _layer_norm(ffn + att, lp["ln2_g"], lp["ln2_b"],
                      cfg.layer_norm_epsilon)
    return out, prob


def encoder_forward(params, inputs, inputs_embed, *, cfg, sdpa_fn):
    """Eval-mode Encoder.forward (all dropouts are identity)."""
    B, n, _ = inputs_embed.shape
    cls = jnp.broadcast_to(params["cls_token"], (B, 1, cfg.d_hidn))
    x = jnp.concatenate([cls, inputs_embed], axis=1) + params["pos_embedding"]
    # get_attn_pad_mask: mask keys where the input token == i_pad.
    # TODO(synk): the PyTorch reference builds the mask over the n tokens only
    # while attention runs on n+1 positions (latent shape bug); here the
    # prepended CLS position is treated as a never-padded key.
    key_pad = jnp.concatenate(
        [jnp.zeros((B, 1), dtype=bool), inputs == cfg.i_pad], axis=1)
    attn_probs = []
    for lp in params["layers"]:
        x, prob = _encoder_layer(lp, cfg, x, key_pad, sdpa_fn)
        attn_probs.append(prob)
    return x, attn_probs


# ---------------------------------------------------------------------------
# Demo / correctness check
# ---------------------------------------------------------------------------

if __name__ == "__main__":
    cfg = EncoderConfig()
    root = jax.random.PRNGKey(0)
    k_params, k_tok, k_emb, k_q, k_k, k_v = jax.random.split(root, 6)

    params = init_encoder_params(k_params, cfg)

    B, n = 2, cfg.n_enc_seq
    # Token ids with trailing padding (i_pad == 0) in the second sequence.
    inputs = jax.random.randint(k_tok, (B, n), 1, 100, dtype=jnp.int32)
    inputs = inputs.at[1, 11:].set(cfg.i_pad)
    inputs_embed = jax.random.normal(k_emb, (B, n, cfg.d_hidn), jnp.float32)

    # --- Unit check: Pallas SDPA vs precision-matched (bf16 MXU) reference ---
    S, H, Dh = n + 1, cfg.n_head, cfg.d_head
    q = jax.random.normal(k_q, (B, S, H, Dh), jnp.float32)
    k = jax.random.normal(k_k, (B, S, H, Dh), jnp.float32)
    v = jax.random.normal(k_v, (B, S, H, Dh), jnp.float32)
    key_pad = jnp.concatenate(
        [jnp.zeros((B, 1), dtype=bool), inputs == cfg.i_pad], axis=1)

    ctx_pl, prob_pl = scaled_dot_product_attention(q, k, v, key_pad, d_head=Dh)
    jax.block_until_ready(ctx_pl)
    ctx_bf, prob_bf = _sdpa_reference(q, k, v, key_pad, d_head=Dh,
                                      mxu_dtype=jnp.bfloat16)
    assert jnp.allclose(ctx_pl, ctx_bf, atol=2e-2, rtol=2e-2)
    assert jnp.allclose(prob_pl.astype(jnp.float32), prob_bf,
                        atol=2e-2, rtol=2e-2)

    # --- Full encoder: Pallas attention core vs plain-JAX references --------
    fwd_pallas = jax.jit(functools.partial(
        encoder_forward, cfg=cfg, sdpa_fn=scaled_dot_product_attention))
    out_pl, probs_pl = fwd_pallas(params, inputs, inputs_embed)
    out_pl = jax.block_until_ready(out_pl)

    out_bf, probs_bf = encoder_forward(
        params, inputs, inputs_embed, cfg=cfg,
        sdpa_fn=functools.partial(_sdpa_reference, mxu_dtype=jnp.bfloat16))
    out_f32, probs_f32 = encoder_forward(
        params, inputs, inputs_embed, cfg=cfg,
        sdpa_fn=functools.partial(_sdpa_reference, mxu_dtype=jnp.float32))

    # Precision-matched check (same bf16 MXU operands, f32 accumulation).
    assert jnp.allclose(out_pl, out_bf, atol=3e-2, rtol=3e-2)
    for p_pl, p_bf in zip(probs_pl, probs_bf):
        assert jnp.allclose(p_pl.astype(jnp.float32), p_bf,
                            atol=3e-2, rtol=3e-2)
    # Loose sanity check against the all-float32 reference.
    assert jnp.allclose(out_pl, out_f32, atol=1.5e-1, rtol=1.5e-1)
    for p_pl, p_32 in zip(probs_pl, probs_f32):
        assert jnp.allclose(p_pl.astype(jnp.float32), p_32,
                            atol=1e-1, rtol=1e-1)

    print("KERNEL_OK")
</pallas_src>

<mosaic_0001>
module attributes {stable_mosaic.version = 11 : i64} {
  func.func @_sdpa_kernel(%arg0: i32, %arg1: i32, %arg2: i32, %arg3: memref<1x128x256xbf16, #tpu.memory_space<vmem>>, %arg4: memref<1x128x256xbf16, #tpu.memory_space<vmem>>, %arg5: memref<1x128x256xbf16, #tpu.memory_space<vmem>>, %arg6: memref<1x1x128xf32, #tpu.memory_space<vmem>>, %arg7: memref<1x128x256xf32, #tpu.memory_space<vmem>>, %arg8: memref<1x2x128x128xbf16, #tpu.memory_space<vmem>>) attributes {dimension_semantics = [#tpu.dimension_semantics<parallel>, #tpu.dimension_semantics<parallel>, #tpu.dimension_semantics<parallel>], iteration_bounds = array<i64: 2, 1, 1>, scalar_prefetch = 0 : i64, scratch_operands = 0 : i64, tpu.core_type = #tpu.core_type<tc>, window_params = [{transform_indices = @transform_0, window_bounds = array<i64: 1, 128, 256>}, {transform_indices = @transform_1, window_bounds = array<i64: 1, 128, 256>}, {transform_indices = @transform_2, window_bounds = array<i64: 1, 128, 256>}, {transform_indices = @transform_3, window_bounds = array<i64: 1, 1, 128>}, {transform_indices = @transform_4, window_bounds = array<i64: 1, 128, 256>}, {transform_indices = @transform_5, window_bounds = array<i64: 1, 2, 128, 128>}]} {
    %c0 = arith.constant 0 : index
    %c0_0 = arith.constant 0 : index
    %c0_1 = arith.constant 0 : index
    %0 = vector.load %arg6[%c0, %c0_0, %c0_1] : memref<1x1x128xf32, #tpu.memory_space<vmem>>, vector<1x1x128xf32>
    %1 = vector.shape_cast %0 : vector<1x1x128xf32> to vector<1x128xf32>
    %c0_2 = arith.constant 0 : index
    %c0_3 = arith.constant 0 : index
    %c0_4 = arith.constant 0 : index
    %2 = vector.load %arg3[%c0_2, %c0_3, %c0_4] : memref<1x128x256xbf16, #tpu.memory_space<vmem>>, vector<1x128x128xbf16>
    %3 = vector.shape_cast %2 : vector<1x128x128xbf16> to vector<128x128xbf16>
    %cst = arith.constant 8.837890e-02 : bf16
    %4 = vector.broadcast %cst : bf16 to vector<128x128xbf16>
    %5 = arith.mulf %3, %4 : vector<128x128xbf16>
    %c0_5 = arith.constant 0 : index
    %c0_6 = arith.constant 0 : index
    %c0_7 = arith.constant 0 : index
    %6 = vector.load %arg4[%c0_5, %c0_6, %c0_7] : memref<1x128x256xbf16, #tpu.memory_space<vmem>>, vector<1x128x128xbf16>
    %7 = vector.shape_cast %6 : vector<1x128x128xbf16> to vector<128x128xbf16>
    %c0_8 = arith.constant 0 : index
    %c0_9 = arith.constant 0 : index
    %c0_10 = arith.constant 0 : index
    %8 = vector.load %arg5[%c0_8, %c0_9, %c0_10] : memref<1x128x256xbf16, #tpu.memory_space<vmem>>, vector<1x128x128xbf16>
    %9 = vector.shape_cast %8 : vector<1x128x128xbf16> to vector<128x128xbf16>
    %cst_11 = arith.constant dense<0.000000e+00> : vector<128x128xf32>
    %10 = tpu.matmul %5, %7, %cst_11 {dimension_numbers = #tpu.dot_dimension_numbers<[1], [1], [0], [0], [0, 0, 1, 0], [], []>} : vector<128x128xbf16>, vector<128x128xbf16>, vector<128x128xf32> -> vector<128x128xf32>
    %11 = vector.broadcast %1 : vector<1x128xf32> to vector<128x128xf32>
    %12 = arith.addf %10, %11 : vector<128x128xf32>
    %cst_12 = arith.constant dense<0xFF800000> : vector<128xf32>
    %13 = vector.multi_reduction <maximumf>, %12, %cst_12 [1] : vector<128x128xf32> to vector<128xf32>
    %14 = vector.shape_cast %13 : vector<128xf32> to vector<128x1xf32>
    %15 = vector.broadcast %14 : vector<128x1xf32> to vector<128x128xf32>
    %16 = arith.subf %12, %15 : vector<128x128xf32>
    %17 = math.exp %16 : vector<128x128xf32>
    %cst_13 = arith.constant dense<0.000000e+00> : vector<128xf32>
    %18 = vector.multi_reduction <add>, %17, %cst_13 [1] : vector<128x128xf32> to vector<128xf32>
    %19 = vector.shape_cast %18 : vector<128xf32> to vector<128x1xf32>
    %20 = tpu.reciprocal %19 {approx = true} : vector<128x1xf32> -> vector<128x1xf32>
    %21 = vector.broadcast %20 : vector<128x1xf32> to vector<128x128xf32>
    %22 = arith.mulf %17, %21 : vector<128x128xf32>
    %23 = arith.truncf %22 : vector<128x128xf32> to vector<128x128xbf16>
    %c0_14 = arith.constant 0 : index
    %c0_15 = arith.constant 0 : index
    %c0_16 = arith.constant 0 : index
    %c0_17 = arith.constant 0 : index
    %24 = vector.load %arg8[%c0_14, %c0_15, %c0_16, %c0_17] : memref<1x2x128x128xbf16, #tpu.memory_space<vmem>>, vector<1x1x128x128xbf16>
    %25 = vector.shape_cast %24 : vector<1x1x128x128xbf16> to vector<128x128xbf16>
    %26 = vector.shape_cast %23 : vector<128x128xbf16> to vector<1x1x128x128xbf16>
    tpu.vector_store %arg8[%c0_14, %c0_15, %c0_16, %c0_17], %26 {strides = array<i32>} : memref<1x2x128x128xbf16, #tpu.memory_space<vmem>>, vector<1x1x128x128xbf16>,
    %cst_18 = arith.constant dense<0.000000e+00> : vector<128x128xf32>
    %27 = tpu.matmul %23, %9, %cst_18 {dimension_numbers = #tpu.dot_dimension_numbers<[1], [0], [0], [1], [0, 0, 1, 1], [], []>} : vector<128x128xbf16>, vector<128x128xbf16>, vector<128x128xf32> -> vector<128x128xf32>
    %c0_19 = arith.constant 0 : index
    %c0_20 = arith.constant 0 : index
    %c0_21 = arith.constant 0 : index
    %28 = vector.load %arg7[%c0_19, %c0_20, %c0_21] : memref<1x128x256xf32, #tpu.memory_space<vmem>>, vector<1x128x128xf32>
    %29 = vector.shape_cast %28 : vector<1x128x128xf32> to vector<128x128xf32>
    %30 = vector.shape_cast %27 : vector<128x128xf32> to vector<1x128x128xf32>
    tpu.vector_store %arg7[%c0_19, %c0_20, %c0_21], %30 {strides = array<i32>} : memref<1x128x256xf32, #tpu.memory_space<vmem>>, vector<1x128x128xf32>,
    %c0_22 = arith.constant 0 : index
    %c0_23 = arith.constant 0 : index
    %c128 = arith.constant 128 : index
    %31 = vector.load %arg3[%c0_22, %c0_23, %c128] : memref<1x128x256xbf16, #tpu.memory_space<vmem>>, vector<1x128x128xbf16>
    %32 = vector.shape_cast %31 : vector<1x128x128xbf16> to vector<128x128xbf16>
    %cst_24 = arith.constant 8.837890e-02 : bf16
    %33 = vector.broadcast %cst_24 : bf16 to vector<128x128xbf16>
    %34 = arith.mulf %32, %33 : vector<128x128xbf16>
    %c0_25 = arith.constant 0 : index
    %c0_26 = arith.constant 0 : index
    %c128_27 = arith.constant 128 : index
    %35 = vector.load %arg4[%c0_25, %c0_26, %c128_27] : memref<1x128x256xbf16, #tpu.memory_space<vmem>>, vector<1x128x128xbf16>
    %36 = vector.shape_cast %35 : vector<1x128x128xbf16> to vector<128x128xbf16>
    %c0_28 = arith.constant 0 : index
    %c0_29 = arith.constant 0 : index
    %c128_30 = arith.constant 128 : index
    %37 = vector.load %arg5[%c0_28, %c0_29, %c128_30] : memref<1x128x256xbf16, #tpu.memory_space<vmem>>, vector<1x128x128xbf16>
    %38 = vector.shape_cast %37 : vector<1x128x128xbf16> to vector<128x128xbf16>
    %cst_31 = arith.constant dense<0.000000e+00> : vector<128x128xf32>
    %39 = tpu.matmul %34, %36, %cst_31 {dimension_numbers = #tpu.dot_dimension_numbers<[1], [1], [0], [0], [0, 0, 1, 0], [], []>} : vector<128x128xbf16>, vector<128x128xbf16>, vector<128x128xf32> -> vector<128x128xf32>
    %40 = vector.broadcast %1 : vector<1x128xf32> to vector<128x128xf32>
    %41 = arith.addf %39, %40 : vector<128x128xf32>
    %cst_32 = arith.constant dense<0xFF800000> : vector<128xf32>
    %42 = vector.multi_reduction <maximumf>, %41, %cst_32 [1] : vector<128x128xf32> to vector<128xf32>
    %43 = vector.shape_cast %42 : vector<128xf32> to vector<128x1xf32>
    %44 = vector.broadcast %43 : vector<128x1xf32> to vector<128x128xf32>
    %45 = arith.subf %41, %44 : vector<128x128xf32>
    %46 = math.exp %45 : vector<128x128xf32>
    %cst_33 = arith.constant dense<0.000000e+00> : vector<128xf32>
    %47 = vector.multi_reduction <add>, %46, %cst_33 [1] : vector<128x128xf32> to vector<128xf32>
    %48 = vector.shape_cast %47 : vector<128xf32> to vector<128x1xf32>
    %49 = tpu.reciprocal %48 {approx = true} : vector<128x1xf32> -> vector<128x1xf32>
    %50 = vector.broadcast %49 : vector<128x1xf32> to vector<128x128xf32>
    %51 = arith.mulf %46, %50 : vector<128x128xf32>
    %52 = arith.truncf %51 : vector<128x128xf32> to vector<128x128xbf16>
    %c0_34 = arith.constant 0 : index
    %c1 = arith.constant 1 : index
    %c0_35 = arith.constant 0 : index
    %c0_36 = arith.constant 0 : index
    %53 = vector.load %arg8[%c0_34, %c1, %c0_35, %c0_36] : memref<1x2x128x128xbf16, #tpu.memory_space<vmem>>, vector<1x1x128x128xbf16>
    %54 = vector.shape_cast %53 : vector<1x1x128x128xbf16> to vector<128x128xbf16>
    %55 = vector.shape_cast %52 : vector<128x128xbf16> to vector<1x1x128x128xbf16>
    tpu.vector_store %arg8[%c0_34, %c1, %c0_35, %c0_36], %55 {strides = array<i32>} : memref<1x2x128x128xbf16, #tpu.memory_space<vmem>>, vector<1x1x128x128xbf16>,
    %cst_37 = arith.constant dense<0.000000e+00> : vector<128x128xf32>
    %56 = tpu.matmul %52, %38, %cst_37 {dimension_numbers = #tpu.dot_dimension_numbers<[1], [0], [0], [1], [0, 0, 1, 1], [], []>} : vector<128x128xbf16>, vector<128x128xbf16>, vector<128x128xf32> -> vector<128x128xf32>
    %c0_38 = arith.constant 0 : index
    %c0_39 = arith.constant 0 : index
    %c128_40 = arith.constant 128 : index
    %57 = vector.load %arg7[%c0_38, %c0_39, %c128_40] : memref<1x128x256xf32, #tpu.memory_space<vmem>>, vector<1x128x128xf32>
    %58 = vector.shape_cast %57 : vector<1x128x128xf32> to vector<128x128xf32>
    %59 = vector.shape_cast %56 : vector<128x128xf32> to vector<1x128x128xf32>
    tpu.vector_store %arg7[%c0_38, %c0_39, %c128_40], %59 {strides = array<i32>} : memref<1x128x256xf32, #tpu.memory_space<vmem>>, vector<1x128x128xf32>,
    return
  }
  func.func @transform_0(%arg0: i32, %arg1: i32, %arg2: i32) -> (i32, i32, i32) {
    %c0_i32 = arith.constant 0 : i32
    return %arg0, %arg2, %arg1 : i32, i32, i32
  }
  func.func @transform_1(%arg0: i32, %arg1: i32, %arg2: i32) -> (i32, i32, i32) {
    %c0_i32 = arith.constant 0 : i32
    %c0_i32_0 = arith.constant 0 : i32
    return %arg0, %c0_i32, %arg1 : i32, i32, i32
  }
  func.func @transform_2(%arg0: i32, %arg1: i32, %arg2: i32) -> (i32, i32, i32) {
    %c0_i32 = arith.constant 0 : i32
    %c0_i32_0 = arith.constant 0 : i32
    return %arg0, %c0_i32, %arg1 : i32, i32, i32
  }
  func.func @transform_3(%arg0: i32, %arg1: i32, %arg2: i32) -> (i32, i32, i32) {
    %c0_i32 = arith.constant 0 : i32
    %c0_i32_0 = arith.constant 0 : i32
    %c0_i32_1 = arith.constant 0 : i32
    return %arg0, %c0_i32, %c0_i32_0 : i32, i32, i32
  }
  func.func @transform_4(%arg0: i32, %arg1: i32, %arg2: i32) -> (i32, i32, i32) {
    %c0_i32 = arith.constant 0 : i32
    return %arg0, %arg2, %arg1 : i32, i32, i32
  }
  func.func @transform_5(%arg0: i32, %arg1: i32, %arg2: i32) -> (i32, i32, i32, i32) {
    %c0_i32 = arith.constant 0 : i32
    %c0_i32_0 = arith.constant 0 : i32
    return %arg0, %arg1, %arg2, %c0_i32 : i32, i32, i32, i32
  }
}

</mosaic_0001>

<bundles_post_ra>
// kernel: tpu_custom_call.1
= control target key start
LH: loop header
LB: loop body
LE: loop exit
PB: predicated region body
PF: predicated region fallthrough
CT: control target
= control target key end

     0   :  { %s3682_s0 = inlined_call_operand.hbm [shape: bf16[2,128,256], index: 0, kind: input, shape index: {}]   ;;  %s3683_s1 = inlined_call_operand.hbm [shape: bf16[2,128,256], index: 1, kind: input, shape index: {}]   ;;  %s3684_s2 = inlined_call_operand.hbm [shape: bf16[2,128,256], index: 2, kind: input, shape index: {}]   ;;  %s3685_s3 = inlined_call_operand.hbm [shape: f32[2,1,128], index: 3, kind: input, shape index: {}]   ;;  %s3686_s4 = inlined_call_operand.hbm [shape: f32[2,128,256], index: 4, kind: output, shape index: {0}]   ;;  %s3687_s5 = inlined_call_operand.hbm [shape: bf16[2,2,128,128], index: 5, kind: output, shape index: {1}]  }
   0x1   :  { %3701 = sst [smem:[#allocation24_spill]] %s3683_s1 }
   0x2   :  { %11 = vsyncpa [#allocation3], 0 }
   0x3   :  { %13 = vsyncpa [#allocation3 + $0x1], 0 }
   0x4   :  { %14 = vsyncpa [#allocation6], 0 }
   0x5   :  { %16 = vsyncpa [#allocation6 + $0x1], 0 }
   0x6   :  { %17 = vsyncpa [#allocation9], 0 }
   0x7   :  { %19 = vsyncpa [#allocation9 + $0x1], 0 }
   0x8   :  { %20 = vsyncpa [#allocation4], 0 }
   0x9   :  { %22 = vsyncpa [#allocation4 + $0x1], 0 }
   0xa   :  { %23 = vsyncpa [#allocation12], 0 }
   0xb   :  { %25 = vsyncpa [#allocation12 + $0x1], 0  ;;  %s2939_s18 = smov 0   ;;  %s2941_s19 = smov 0  }
   0xc   :  { %s2943_s20 = smov 0   ;;  %s2945_s21 = smov 0  }
   0xd   :  { %s2947_s22 = smov 0   ;;  %s2949_s23 = smov 0  }
   0xe LB: > { %3702 = sst [smem:[#allocation18_spill]] %s2875_s18  ;;  %s2970_s24 = sadd.s32 4294967295, %s2895_s23   ;;  %s2895_s23 = sphi %s2949_s23, %s31_s23   ;;  %s2891_s22 = sphi %s2947_s22, %s3735_s22   ;;  %s2887_s21 = sphi %s2945_s21, %s3734_s21   ;;  %s2883_s20 = sphi %s2943_s20, %s3730_s20   ;;  %s2879_s19 = sphi %s2941_s19, %s3733_s19   ;;  %s2875_s18 = sphi %s2939_s18, %s3732_s18  }
   0xf   : > { %3703 = sst [smem:[#allocation19_spill]] %s2883_s20  ;;  %s1957_s25 = sadd.s32 4294967294, %s2895_s23  }
  0x10   : > { %3704 = sst [smem:[#allocation20_spill]] %s2895_s23  ;;  %s50_s26 = sadd.s32 1, %s2891_s22 }
  0x11   : > { %s61_s27 = sadd.s32 1, %s2883_s20  ;;  %p52_p0 = scmp.ge.s32.totalorder %s50_s26, 2 }
  0x12   : > { %p68_p1 = scmp.ne.s32.totalorder %s2883_s20, %s2879_s19  ;;  %p69_p2 = scmp.eq.s32.totalorder %s2895_s23, 0 }
  0x13   : > { %p74_p3 = scmp.ne.s32.totalorder %s2879_s19, %s2875_s18  ;;  %s3737_s26 = smov (%p52_p0, %s50_s26), 0 }
  0x14   : > { %3705 = sst [smem:[#allocation21_spill]] %s3737_s26  ;;  %p2982_p4 = por %p69_p2, %p68_p1 }
  0x15   : > { %p75_p5 = scmp.eq.s32.totalorder %s2970_s24, 0  ;;  %s54_s29 = ssub.s32 %s2891_s22, %s3737_s26 }
  0x16   : > { %p184_p6 = scmp.eq.s32.totalorder %s2970_s24, 1  ;;  %p59_p7 = scmp.eq.s32.totalorder %s54_s29, 0 }
  0x17   : > { %p2990_p8 = por %p75_p5, %p74_p3  ;;  %p190_p10 = scmp.eq.s32.totalorder %s1957_s25, 1 }
  0x18   : > { %p2994_p9 = por %p184_p6, %p68_p1  ;;  %p2437_p13 = scmp.lt.s32.totalorder %s2895_s23, 2 }
  0x19   : > { %s3707_s30 = scalar_select %p2990_p8, 1, 0 }
  0x1a   : > { %s3708_s6 = scalar_select %p2994_p9, 1, 0 }
  0x1b   : > { %s2999_s7 = scalar_select %p59_p7, %s2883_s20, %s61_s27  }
  0x1c   : > { %p3001_p11 = por %p190_p10, %p74_p3  ;;  %s3008_s9 = sand.u32 1, %s2883_s20  }
  0x1d   : > { %3709 = sst [smem:[#allocation22_spill]] %s2999_s7  ;;  %s3011_s10 = sshll.u32 %s3008_s9, 7 }
  0x1e   : > { %s3710_s8 = scalar_select %p3001_p11, 1, 0 }
  0x1f   : > { %s3014_s11 = sshll.u32 %s2891_s22, 11  ;;  %p3018_p0 = pnand %p2437_p13, %p2982_p4 }
  0x20   : > { %3711 = sst [smem:[#allocation23_spill]] %s3710_s8  ;;  %s266_s13 = sand.u32 1, %s2895_s23  }
  0x21   : > { %s3712_s12 = scalar_select %p3018_p0, 1, 0 }
  0x22   : > { %s3713_s1 = sld [smem:[#allocation24_spill]]  ;;  %s270_s17 = scalar_lea.vmem [#allocation5], %s3011_s10 }
  0x23   : > { %s279_s25 = sshll.u32 %s270_s17, 4  ;;  %s3034_s27 = scalar_lea.sflag [#allocation6], %s266_s13  ;;  %s3031_s25 = int_to_ptr.vmem [resolvable:$true] %s279_s25 }
  0x24   : > { %p3040_p4 = pneg %p3018_p0 }
  0x28   : > { %s3027_s16 = scalar_lea.hbm %s3713_s1, %s3014_s11  ;;  %s2658_s17 = scalar_lea.hbm %s3713_s1, 4096 }
  0x29   : > { %s2653_s28 = scalar_lea.hbm %s3027_s16, 2048  ;;  %p2659_p7 = scmp.lt.u32.totalorder %s3027_s16, %s3713_s1 }
  0x2a   : > { %p2654_p3 = scmp.ne.s32.totalorder %s3027_s16, %s2653_s28  ;;  %p2660_p10 = scmp.lt.u32.totalorder %s2658_s17, %s2653_s28 }
  0x2b   : > { %p2662_p12 = scmp.lt.u32.totalorder %s2653_s28, %s3027_s16 }
  0x2c   : > { %p2656_p5 = pnand %p3040_p4, %p2654_p3  ;;  %p2661_p13 = por %p2660_p10, %p2659_p7 }
  0x2e   : > { %p2657_p6 = pneg %p2656_p5  ;;  %p2663_p1 = por %p2662_p12, %p2661_p13 }
  0x30   : > { %p2664_p2 = pnand %p2663_p1, %p2657_p6 }
  0x32   : > { %2667 = shalt.err (!%p2664_p2)
}
  0x33   : > { %s2668_s13 = scalar_lea.vmem %s3031_s25, 2048  ;;  %s2897_s14 = smov [#allocation5]  }
  0x34   : > { %p2669_p3 = scmp.ne.s32.totalorder %s3031_s25, %s2668_s13  ;;  %s2673_s15 = sshll.u32 %s2897_s14, 4  ;;  %s2674_s15 = int_to_ptr.vmem [resolvable:$false] %s2673_s15 }
  0x35   : > { %s2675_s26 = scalar_lea.vmem %s2674_s15, 4096  ;;  %p2676_p9 = scmp.lt.s32.totalorder %s3031_s25, %s2674_s15 }
  0x36   : > { %p2671_p5 = pnand %p2669_p3, %p3040_p4  ;;  %p2677_p8 = scmp.lt.s32.totalorder %s2675_s26, %s2668_s13 }
  0x38   : > { %p2672_p11 = pneg %p2671_p5  ;;  %p2678_p7 = por %p2677_p8, %p2676_p9 }
  0x3a   : > { %p2679_p10 = pnand %p2678_p7, %p2672_p11 }
  0x3c   : > { %2682 = shalt.err (!%p2679_p10)
}
  0x3d   : > { %s3691_s7 = smov 128   ;;  %s3693_s28 = smov 8  }
  0x3e   : > { %2423 = dma.hbm_to_vmem [thread:$0]  (!%p3018_p0), %s3027_s16, 2048, %s3031_s25, %s3034_s27, %s3691_s7, %s3691_s7, %s3693_s28  }
  0x3f   : > { %p3715_p8 = scmp.lt.s32.totalorder %s2895_s23, 3  ;;  %p3716_p9 = scmp.ge.s32.totalorder %s2895_s23, 1 }
  0x40   : > { %s3079_s15 = scalar_lea.hbm %s3682_s0, %s3014_s11  ;;  %s244_s26 = scalar_lea.vmem [#allocation2], %s3011_s10 }
  0x41   : > { %p3071_p11 = pnand %p3716_p9, %p3715_p8  ;;  %s256_s1 = sshll.u32 %s244_s26, 4  ;;  %s3082_s1 = int_to_ptr.vmem [resolvable:$true] %s256_s1 }
  0x42   : > { %s3088_s7 = scalar_lea.hbm %s3684_s2, %s3014_s11  ;;  %s241_s28 = scalar_lea.sflag [#allocation3], %s3008_s9 }
  0x43   : > { %s3717_s17 = scalar_select %p3071_p11, 1, 0 }
  0x44   : > { %s2683_s20 = scalar_lea.hbm %s3079_s15, 2048  ;;  %s2688_s23 = scalar_lea.hbm %s3682_s0, 4096 }
  0x45   : > { %p2684_p12 = scmp.ne.s32.totalorder %s3079_s15, %s2683_s20  ;;  %p2689_p6 = scmp.lt.u32.totalorder %s3079_s15, %s3682_s0 }
  0x46   : > { %p2690_p13 = scmp.lt.u32.totalorder %s2688_s23, %s2683_s20  ;;  %p2692_p5 = scmp.lt.u32.totalorder %s2683_s20, %s3079_s15 }
  0x47   : > { %p2686_p1 = pnand %p2684_p12, %p3040_p4 }
  0x48   : > { %p2691_p3 = por %p2690_p13, %p2689_p6 }
  0x49   : > { %p2687_p2 = pneg %p2686_p1 }
  0x4a   : > { %p2693_p7 = por %p2692_p5, %p2691_p3 }
  0x4c   : > { %p2694_p10 = pnand %p2693_p7, %p2687_p2 }
  0x4e   : > { %2697 = shalt.err (!%p2694_p10)
}
  0x4f   : > { %s2698_s11 = scalar_lea.vmem %s3082_s1, 2048  ;;  %s2900_s26 = smov [#allocation2]  }
  0x50   : > { %p2699_p8 = scmp.ne.s32.totalorder %s3082_s1, %s2698_s11  ;;  %s2703_s16 = sshll.u32 %s2900_s26, 4  ;;  %s2704_s16 = int_to_ptr.vmem [resolvable:$false] %s2703_s16 }
  0x51   : > { %s2705_s18 = scalar_lea.vmem %s2704_s16, 4096  ;;  %p2706_p1 = scmp.lt.s32.totalorder %s3082_s1, %s2704_s16 }
  0x52   : > { %p2701_p9 = pnand %p2699_p8, %p3040_p4  ;;  %p2707_p11 = scmp.lt.s32.totalorder %s2705_s18, %s2698_s11 }
  0x54   : > { %p2702_p12 = pneg %p2701_p9  ;;  %p2708_p6 = por %p2707_p11, %p2706_p1 }
  0x56   : > { %p2709_p13 = pnand %p2708_p6, %p2702_p12 }
  0x58   : > { %2712 = shalt.err (!%p2709_p13)
}
  0x59   : > { %s3718_s20 = smov 8   ;;  %s3719_s23 = smov 128  }
  0x5a   : > { %2420 = dma.hbm_to_vmem [thread:$0]  (!%p3018_p0), %s3079_s15, 2048, %s3082_s1, %s241_s28, %s3719_s23, %s3719_s23, %s3718_s20  }
  0x5b   : > { %s293_s8 = scalar_lea.vmem [#allocation7], %s3011_s10  ;;  %s2713_s13 = scalar_lea.hbm %s3088_s7, 2048 }
  0x5c   : > { %s302_s25 = sshll.u32 %s293_s8, 4  ;;  %p2714_p11 = scmp.ne.s32.totalorder %s3088_s7, %s2713_s13  ;;  %s3118_s25 = int_to_ptr.vmem [resolvable:$true] %s302_s25 }
  0x5d   : > { %s2718_s26 = scalar_lea.hbm %s3684_s2, 4096  ;;  %p2719_p5 = scmp.lt.u32.totalorder %s3088_s7, %s3684_s2 }
  0x5e   : > { %p2716_p2 = pnand %p2714_p11, %p3040_p4  ;;  %p2720_p7 = scmp.lt.u32.totalorder %s2718_s26, %s2713_s13 }
  0x5f   : > { %p2722_p8 = scmp.lt.u32.totalorder %s2713_s13, %s3088_s7 }
  0x60   : > { %p2717_p3 = pneg %p2716_p2  ;;  %p2721_p10 = por %p2720_p7, %p2719_p5 }
  0x62   : > { %p2723_p9 = por %p2722_p8, %p2721_p10 }
  0x64   : > { %p2724_p12 = pnand %p2723_p9, %p2717_p3 }
  0x66   : > { %2727 = shalt.err (!%p2724_p12)
}
  0x67   : > { %s2728_s1 = scalar_lea.vmem %s3118_s25, 2048  ;;  %s2901_s10 = smov [#allocation7]  }
  0x68   : > { %p2729_p1 = scmp.ne.s32.totalorder %s3118_s25, %s2728_s1  ;;  %s2733_s28 = sshll.u32 %s2901_s10, 4  ;;  %s2734_s28 = int_to_ptr.vmem [resolvable:$false] %s2733_s28 }
  0x69   : > { %s2735_s15 = scalar_lea.vmem %s2734_s28, 4096  ;;  %p2736_p11 = scmp.lt.s32.totalorder %s3118_s25, %s2734_s28 }
  0x6a   : > { %p2731_p6 = pnand %p2729_p1, %p3040_p4  ;;  %p2737_p2 = scmp.lt.s32.totalorder %s2735_s15, %s2728_s1 }
  0x6c   : > { %p2732_p13 = pneg %p2731_p6  ;;  %p2738_p5 = por %p2737_p2, %p2736_p11 }
  0x6e   : > { %p2739_p7 = pnand %p2738_p5, %p2732_p13 }
  0x70   : > { %2742 = shalt.err (!%p2739_p7)
}
  0x71   : > { %2426 = dma.hbm_to_vmem [thread:$0]  (!%p3018_p0), %s3088_s7, 2048, %s3118_s25, %s3034_s27, %s3719_s23, %s3719_s23, %s3718_s20  }
  0x72   : > { %s1969_s8 = sshll.u32 %s2891_s22, 4  ;;  %s315_s13 = scalar_lea.vmem [#allocation8], %s3008_s9 }
  0x73   : > { %s322_s14 = sshll.u32 %s315_s13, 4  ;;  %s3150_s16 = scalar_lea.hbm %s3685_s3, %s1969_s8  ;;  %s323_s14 = int_to_ptr.vmem [resolvable:$true] %s322_s14 }
  0x74   : > { %s313_s18 = scalar_lea.sflag [#allocation9], %s3008_s9  ;;  %s2743_s1 = scalar_lea.hbm %s3150_s16, 16 }
  0x75   : > { %p2744_p3 = scmp.ne.s32.totalorder %s3150_s16, %s2743_s1  ;;  %s2748_s20 = scalar_lea.hbm %s3685_s3, 32 }
  0x76   : > { %p2749_p9 = scmp.lt.u32.totalorder %s3150_s16, %s3685_s3  ;;  %p2750_p12 = scmp.lt.u32.totalorder %s2748_s20, %s2743_s1 }
  0x77   : > { %p2746_p10 = pnand %p2744_p3, %p3040_p4  ;;  %p2752_p6 = scmp.lt.u32.totalorder %s2743_s1, %s3150_s16 }
  0x78   : > { %p2751_p1 = por %p2750_p12, %p2749_p9 }
  0x79   : > { %p2747_p8 = pneg %p2746_p10 }
  0x7a   : > { %p2753_p13 = por %p2752_p6, %p2751_p1 }
  0x7c   : > { %p2754_p11 = pnand %p2753_p13, %p2747_p8 }
  0x7e   : > { %2757 = shalt.err (!%p2754_p11)
}
  0x7f   : > { %s2758_s9 = scalar_lea.vmem %s323_s14, 16  ;;  %s2902_s10 = smov [#allocation8]  }
  0x80   : > { %p2759_p2 = scmp.ne.s32.totalorder %s323_s14, %s2758_s9  ;;  %s2763_s28 = sshll.u32 %s2902_s10, 4  ;;  %s2764_s28 = int_to_ptr.vmem [resolvable:$false] %s2763_s28 }
  0x81   : > { %s2765_s15 = scalar_lea.vmem %s2764_s28, 32  ;;  %p2766_p3 = scmp.lt.s32.totalorder %s323_s14, %s2764_s28 }
  0x82   : > { %p2761_p5 = pnand %p2759_p2, %p3040_p4  ;;  %p2767_p10 = scmp.lt.s32.totalorder %s2765_s15, %s2758_s9 }
  0x84   : > { %p2762_p7 = pneg %p2761_p5  ;;  %p2768_p0 = por %p2767_p10, %p2766_p3 }
  0x86   : > { %p2769_p9 = pnand %p2768_p0, %p2762_p7 }
  0x88   : > { %2772 = shalt.err (!%p2769_p9)
}
  0x89   : > { %p3720_p12 = scmp.ne.s32.totalorder %s3712_s12, 0  ;;  %p3721_p8 = scmp.ne.s32.totalorder %s3717_s17, 0 }
  0x8a   : > { %s3173_s29 = sand.u32 (!%p3721_p8), 1, %s2879_s19   ;;  %p3722_p0 = scmp.ne.s32.totalorder (!%p3721_p8), %s3707_s30, 0 }
  0x8b   : > { %2429 = dma.hbm_to_vmem [thread:$0]  (!%p3720_p12), %s3150_s16, 16, %s323_s14, %s313_s18  }
  0x8c   : > { %331 = sbr.rel (%p3721_p8) target bundleno = 1609 (0x649), region = 36  ;;  %s3176_s8 = sshll.u32 (!%p3721_p8), %s3173_s29, 7 }
  0x8d   : > { %s334_s13 = scalar_lea.sflag (!%p3721_p8), [#allocation3], %s3173_s29  ;;  %s3180_s11 = scalar_lea.vmem (!%p3721_p8), [#allocation2], %s3176_s8 }
  0x93   : > { %2854 = dma.done.wait (%p3722_p0), %s334_s13, 2048  }
  0x94   : > { %2856 = vsyncadd (%p3722_p0), %s334_s13, 4294965248  ;;  %s342_s12 = sand.u32 1, %s2970_s24   ;;  %s3188_s14 = scalar_lea.vmem [#allocation5], %s3176_s8 }
  0x95   : > { %s343_s17 = scalar_lea.sflag [#allocation6], %s342_s12 }
  0x96   : > { %2858 = dma.done.wait (%p3722_p0), %s343_s17, 4096  }
  0x97   : > { %2860 = vsyncadd (%p3722_p0), %s343_s17, 4294963200  ;;  %s3195_s26 = scalar_lea.vmem [#allocation7], %s3176_s8  ;;  %s361_s16 = scalar_lea.sflag [#allocation9], %s3173_s29 }
  0x98   : > { %s363_s18 = scalar_lea.vmem [#allocation8], %s3173_s29 }
  0x99   : > { %2862 = dma.done.wait (%p3722_p0), %s361_s16, 16  }
  0x9a   : > { %2864 = vsyncadd (%p3722_p0), %s361_s16, 4294967280  ;;  %v2493_v0 = vld [vmem:[%s3188_s14] ss:$8 sps:$4 sm:$0xff]   ;;  %v2494_v1 = vld [vmem:[%s3188_s14 + $0x10] ss:$8 sps:$4 sm:$0xff]   ;;  %s3363_s24 = scalar_lea.vmem [#allocation11], %s3176_s8 }
  0x9b   : > { %2277 = vmatprep.subr.bf16.mxu0 %v2493_v0  ;;  %v2495_v2 = vld [vmem:[%s3188_s14 + $0x20] ss:$8 sps:$4 sm:$0xff]   ;;  %v2496_v8 = vld [vmem:[%s3188_s14 + $0x30] ss:$8 sps:$4 sm:$0xff]   ;;  %s1974_s30 = sshll.u32 %s3173_s29, 8  ;;  %s2117_s27 = sshll.u32 %s2887_s21, 11 }
  0x9c   : > { %2278 = vmatpush3.bf16.xpose.msra.mxu0 %v2493_v0  ;;  %v420_v3 = vld [vmem:[%s3180_s11] sm:$0xf]  ;;  %v421_v4 = vld [vmem:[%s3180_s11 + $0x8] sm:$0xf]  ;;  %v2498_v10 = vld [vmem:[%s3188_s14 + $0x50] ss:$8 sps:$4 sm:$0xff]   ;;  %s3582_s25 = scalar_lea.hbm %s3687_s5, %s2117_s27 }
  0x9d   : > { %2279 = vmatprep.subr.bf16.mxu0 %v2494_v1  ;;  %v436_v5 = vmul.bf16 1035287989, %v420_v3  ;;  %v437_v6 = vmul.bf16 1035287989, %v421_v4  ;;  %v2497_v9 = vld [vmem:[%s3188_s14 + $0x40] ss:$8 sps:$4 sm:$0xff]  }
  0x9e   : > { %v2499_v11 = vld [vmem:[%s3188_s14 + $0x60] ss:$8 sps:$4 sm:$0xff]   ;;  %v2500_v12 = vld [vmem:[%s3188_s14 + $0x70] ss:$8 sps:$4 sm:$0xff]   ;;  %s3411_s1 = scalar_lea.vmem [#allocation10], %s1974_s30  ;;  %s1756_s7 = sshll.u32 %s3363_s24, 4  ;;  %s3584_s7 = int_to_ptr.vmem [resolvable:$true] %s1756_s7 }
  0x9f   : > { %v1977_v7 = vcombine.low %v436_v5, %v437_v6  ;;  %v422_v13 = vld [vmem:[%s3180_s11 + $0x10] sm:$0xf]  ;;  %v423_v14 = vld [vmem:[%s3180_s11 + $0x18] sm:$0xf]  ;;  %v424_v15 = vld [vmem:[%s3180_s11 + $0x20] sm:$0xf] }
  0xa0   : > { %v425_v16 = vld [vmem:[%s3180_s11 + $0x28] sm:$0xf]  ;;  %v438_v17 = vmul.bf16 1035287989, %v422_v13  ;;  %v439_v18 = vmul.bf16 1035287989, %v423_v14 }
  0xa1   : > { %2293 = vmatprep.mubr.bf16.mxu0 %v1977_v7  ;;  %v440_v19 = vmul.bf16 1035287989, %v424_v15  ;;  %v441_v20 = vmul.bf16 1035287989, %v425_v16  ;;  %v426_v23 = vld [vmem:[%s3180_s11 + $0x30] sm:$0xf] }
  0xa2   : > { %v1978_v21 = vcombine.low %v438_v17, %v439_v18  ;;  %v427_v24 = vld [vmem:[%s3180_s11 + $0x38] sm:$0xf]  ;;  %v428_v25 = vld [vmem:[%s3180_s11 + $0x40] sm:$0xf]  ;;  %v429_v26 = vld [vmem:[%s3180_s11 + $0x48] sm:$0xf] }
  0xa3   : > { %v1979_v22 = vcombine.low %v440_v19, %v441_v20  ;;  %v442_v27 = vmul.bf16 1035287989, %v426_v23  ;;  %v443_v28 = vmul.bf16 1035287989, %v427_v24  ;;  %v444_v29 = vmul.bf16 1035287989, %v428_v25 }
  0xa4   : > { %2280 = vmatpush3.bf16.xpose.msra.mxu0 %v2494_v1  ;;  %v445_v30 = vmul.bf16 1035287989, %v429_v26  ;;  %v430_v33 = vld [vmem:[%s3180_s11 + $0x50] sm:$0xf]  ;;  %v431_v34 = vld [vmem:[%s3180_s11 + $0x58] sm:$0xf] }
  0xa5   : > { %2281 = vmatprep.subr.bf16.mxu0 %v2495_v2  ;;  %v1980_v31 = vcombine.low %v442_v27, %v443_v28  ;;  %v432_v35 = vld [vmem:[%s3180_s11 + $0x60] sm:$0xf]  ;;  %v433_v36 = vld [vmem:[%s3180_s11 + $0x68] sm:$0xf]  ;;  %v446_v37 = vmul.bf16 1035287989, %v430_v33 }
  0xa6   : > { %v1981_v32 = vcombine.low %v444_v29, %v445_v30  ;;  %v447_v38 = vmul.bf16 1035287989, %v431_v34  ;;  %v448_v39 = vmul.bf16 1035287989, %v432_v35  ;;  %v449_v40 = vmul.bf16 1035287989, %v433_v36 }
  0xa7   : > { %v434_v43 = vld [vmem:[%s3180_s11 + $0x70] sm:$0xf]  ;;  %v435_v44 = vld [vmem:[%s3180_s11 + $0x78] sm:$0xf]  ;;  %v3229_v48 = vld [vmem:[%s363_s18] ss:$0 sm:$0xff] }
  0xa8   : > { %v1982_v41 = vcombine.low %v446_v37, %v447_v38  ;;  %v1983_v42 = vcombine.low %v448_v39, %v449_v40  ;;  %v450_v45 = vmul.bf16 1035287989, %v434_v43  ;;  %v451_v46 = vmul.bf16 1035287989, %v435_v44  ;;  %v2501_v17 = vld [vmem:[%s3195_s26] ss:$8 sps:$4 sm:$0xff]  }
  0xa9   : > { %v2502_v18 = vld [vmem:[%s3195_s26 + $0x10] ss:$8 sps:$4 sm:$0xff]   ;;  %2309 = vmatprep.subr.bf16.mxu1 %v2501_v17  ;;  %v2503_v19 = vld [vmem:[%s3195_s26 + $0x20] ss:$8 sps:$4 sm:$0xff]   ;;  %s1717_s9 = scalar_lea.sflag [#allocation12], %s3173_s29  ;;  %s2773_s10 = scalar_lea.vmem %s3584_s7, 2048 }
  0xaa   : > { %v1984_v47 = vcombine.low %v450_v45, %v451_v46  ;;  %2310 = vmatpush3.bf16.msra.mxu1 %v2501_v17  ;;  %v2504_v20 = vld [vmem:[%s3195_s26 + $0x30] ss:$8 sps:$4 sm:$0xff]   ;;  %p2774_p4 = scmp.ne.s32.totalorder %s3584_s7, %s2773_s10  ;;  %p3723_p1 = scmp.ne.s32.totalorder %s3708_s6, 0 }
  0xab   : > { %2311 = vmatprep.subr.bf16.mxu1 %v2502_v18  ;;  %s2903_s28 = smov [#allocation11]  }
  0xac   : > { %2282 = vmatpush3.bf16.xpose.msra.mxu0 %v2495_v2  ;;  %p2775_p6 = pnand %p2774_p4, %p3723_p1  ;;  %s2777_s15 = sshll.u32 %s2903_s28, 4  ;;  %s2778_s15 = int_to_ptr.vmem [resolvable:$false] %s2777_s15 }
  0xad   : > { %2283 = vmatprep.subr.bf16.mxu0 %v2496_v8  ;;  %s2779_s8 = scalar_lea.vmem %s2778_s15, 4096  ;;  %p2780_p11 = scmp.lt.s32.totalorder %s3584_s7, %s2778_s15 }
  0xae   : > { %2312 = vmatpush3.bf16.msra.mxu1 %v2502_v18  ;;  %v2506_v18 = vld [vmem:[%s3195_s26 + $0x50] ss:$8 sps:$4 sm:$0xff]   ;;  %p2776_p13 = pneg %p2775_p6  ;;  %p2781_p2 = scmp.lt.s32.totalorder %s2779_s8, %s2773_s10 }
  0xaf   : > { %2313 = vmatprep.subr.bf16.mxu1 %v2503_v19 }
  0xb0   : > { %p2782_p5 = por %p2781_p2, %p2780_p11 }
  0xb2   : > { %2314 = vmatpush3.bf16.msra.mxu1 %v2503_v19  ;;  %p2783_p7 = pnand %p2782_p5, %p2776_p13 }
  0xb3   : > { %2315 = vmatprep.subr.bf16.mxu1 %v2504_v20 }
  0xb4   : > { %2284 = vmatpush3.bf16.xpose.msra.mxu0 %v2496_v8 }
  0xb5   : > { %2285 = vmatprep.subr.bf16.mxu0 %v2497_v9 }
  0xb6   : > { %2316 = vmatpush3.bf16.msra.mxu1 %v2504_v20  ;;  %v2507_v20 = vld [vmem:[%s3195_s26 + $0x60] ss:$8 sps:$4 sm:$0xff]  }
  0xbc   : > { %2286 = vmatpush3.bf16.xpose.msra.mxu0 %v2497_v9 }
  0xbd   : > { %2287 = vmatprep.subr.bf16.mxu0 %v2498_v10 }
  0xc4   : > { %2288 = vmatpush3.bf16.xpose.msra.mxu0 %v2498_v10 }
  0xc5   : > { %2289 = vmatprep.subr.bf16.mxu0 %v2499_v11 }
  0xcc   : > { %2290 = vmatpush3.bf16.xpose.msra.mxu0 %v2499_v11 }
  0xcd   : > { %2291 = vmatprep.subr.bf16.mxu0 %v2500_v12 }
  0xd4   : > { %2292 = vmatpush3.bf16.xpose.msra.mxu0 %v2500_v12 }
  0xdb   : > { %2294 = vmatmul.mubr.bf16.vlgmr.msra.gmra.mrb[0].mxu0 %v1978_v21 }
  0xdc   : > { %2297 = vmatprep.mubr.bf16.mxu0 %v1979_v22 }
  0xe3   : > { %2298 = vmatmul.mubr.bf16.gmra.mrb[4].mxu0 %v1980_v31 }
  0xe4   : > { %2301 = vmatprep.mubr.bf16.mxu0 %v1981_v32 }
  0xeb   : > { %2302 = vmatmul.mubr.bf16.gmra.mrb[8].mxu0 %v1982_v41 }
  0xec   : > { %2305 = vmatprep.mubr.bf16.mxu0 %v1983_v42 }
  0xf3   : > { %2306 = vmatmul.mubr.bf16.gmra.mrb[12].mxu0 %v1984_v47 }
 0x1ae   : > { %v2295_v49 = vpop.f32.mrb[0].mxu0 }
 0x1af   : > { %v3232_v50 = vadd.f32 %v2295_v49, %v3229_v48  ;;  %v620_v51 = vpop.f32.mrb[1].mxu0 }
 0x1b0   : > { %v621_v52 = vadd.f32 %v3229_v48, %v620_v51  ;;  %v2296_v53 = vpop.f32.mrb[2].mxu0 }
 0x1b1   : > { %687 = vmax.xlane.f32.xlu1 %v3232_v50  ;;  %v623_v54 = vpop.f32.mrb[3].mxu0  ;;  %v3237_v55 = vadd.f32 %v2296_v53, %v3229_v48 }
 0x1b2   : > { %683 = vmax.xlane.f32.xlu0 %v621_v52  ;;  %v624_v56 = vadd.f32 %v3229_v48, %v623_v54 }
 0x1b5   : > { %689 = vmax.xlane.f32.xlu1 %v3237_v55 }
 0x1b6   : > { %v2299_v57 = vpop.f32.mrb[4].mxu0  ;;  %685 = vmax.xlane.f32.xlu0 %v624_v56 }
 0x1b7   : > { %v636_v58 = vpop.f32.mrb[5].mxu0  ;;  %v3245_v62 = vadd.f32 %v2299_v57, %v3229_v48 }
 0x1b8   : > { %v3242_v59 = vadd.f32 %v3229_v48, %v636_v58  ;;  %v2300_v60 = vpop.f32.mrb[6].mxu0 }
 0x1b9   : > { %v639_v61 = vpop.f32.mrb[7].mxu0  ;;  %v3252_v0 = vadd.f32 %v2300_v60, %v3229_v48 }
 0x1ba   : > { %v3248_v63 = vadd.f32 %v3229_v48, %v639_v61  ;;  %691 = vmax.xlane.f32.xlu0 %v3242_v59 }
 0x1bc   : > { %693 = vmax.xlane.f32.xlu1 %v3248_v63 }
 0x1be   : > { %v2303_v1 = vpop.f32.mrb[8].mxu0  ;;  %695 = vmax.xlane.f32.xlu0 %v3245_v62 }
 0x1bf   : > { %v652_v2 = vpop.f32.mrb[9].mxu0  ;;  %v3261_v6 = vadd.f32 %v2303_v1, %v3229_v48 }
 0x1c0   : > { %v3257_v3 = vadd.f32 %v3229_v48, %v652_v2  ;;  %v2304_v4 = vpop.f32.mrb[10].mxu0  ;;  %697 = vmax.xlane.f32.xlu1 %v3252_v0 }
 0x1c1   : > { %v655_v5 = vpop.f32.mrb[11].mxu0  ;;  %v3268_v8 = vadd.f32 %v2304_v4, %v3229_v48 }
 0x1c2   : > { %v3264_v7 = vadd.f32 %v3229_v48, %v655_v5  ;;  %699 = vmax.xlane.f32.xlu0 %v3257_v3 }
 0x1c4   : > { %701 = vmax.xlane.f32.xlu1 %v3264_v7 }
 0x1c6   : > { %v2307_v9 = vpop.f32.mrb[12].mxu0  ;;  %703 = vmax.xlane.f32.xlu0 %v3261_v6 }
 0x1c7   : > { %v668_v10 = vpop.f32.mrb[13].mxu0  ;;  %v3277_v14 = vadd.f32 %v2307_v9, %v3229_v48  ;;  %v2505_v9 = vld [vmem:[%s3195_s26 + $0x40] ss:$8 sps:$4 sm:$0xff]  }
 0x1c8   : > { %v3273_v11 = vadd.f32 %v3229_v48, %v668_v10  ;;  %v2308_v12 = vpop.f32.mrb[14].mxu0  ;;  %705 = vmax.xlane.f32.xlu1 %v3268_v8  ;;  %2317 = vmatprep.subr.bf16.mxu1 %v2505_v9 }
 0x1c9   : > { %v671_v13 = vpop.f32.mrb[15].mxu0  ;;  %v3284_v16 = vadd.f32 %v2308_v12, %v3229_v48  ;;  %2318 = vmatpush3.bf16.msra.mxu1 %v2505_v9 }
 0x1ca   : > { %v3280_v15 = vadd.f32 %v3229_v48, %v671_v13  ;;  %707 = vmax.xlane.f32.xlu0 %v3273_v11  ;;  %2319 = vmatprep.subr.bf16.mxu1 %v2506_v18 }
 0x1cc   : > { %709 = vmax.xlane.f32.xlu1 %v3280_v15 }
 0x1cd   : > { %2320 = vmatpush3.bf16.msra.mxu1 %v2506_v18 }
 0x1ce   : > { %711 = vmax.xlane.f32.xlu0 %v3277_v14  ;;  %2321 = vmatprep.subr.bf16.mxu1 %v2507_v20 }
 0x1d0   : > { %713 = vmax.xlane.f32.xlu1 %v3284_v16 }
 0x1d1   : > { %2322 = vmatpush3.bf16.msra.mxu1 %v2507_v20 }
 0x23e   : > { %v688_v21 = vpop.xlane.xlu1 %687 }
 0x23f   : > { %v717_v22 = vsub.f32 %v3232_v50, %v688_v21  ;;  %v684_v23 = vpop.xlane.xlu0 %683 }
 0x240   : > { %v715_v24 = vsub.f32 %v621_v52, %v684_v23  ;;  %v2508_v23 = vld [vmem:[%s3195_s26 + $0x70] ss:$8 sps:$4 sm:$0xff]  }
 0x241   : > { %v735_v27 = vmul.f32 1.442695, %v717_v22  ;;  %2323 = vmatprep.subr.bf16.mxu1 %v2508_v23 }
 0x242   : > { %v731_v25 = vmul.f32 1.442695, %v715_v24  ;;  %v690_v26 = vpop.xlane.xlu1 %689  ;;  %2324 = vmatpush3.bf16.msra.mxu1 %v2508_v23 }
 0x243   : > { %v718_v28 = vsub.f32 %v3237_v55, %v690_v26  ;;  %v686_v29 = vpop.xlane.xlu0 %685  ;;  %v2509_v26 = vld [vmem:[%s3188_s14 + $0x4] ss:$8 sps:$4 sm:$0xff]  }
 0x244   : > { %2525 = vpow2.f32 %v731_v25  ;;  %v716_v30 = vsub.f32 %v624_v56, %v686_v29  ;;  %2341 = vmatprep.subr.bf16.mxu1 %v2509_v26 }
 0x245   : > { %2527 = vpow2.f32 %v735_v27  ;;  %v737_v32 = vmul.f32 1.442695, %v718_v28 }
 0x246   : > { %v733_v31 = vmul.f32 1.442695, %v716_v30 }
 0x247   : > { %v692_v33 = vpop.xlane.xlu0 %691 }
 0x248   : > { %2529 = vpow2.f32 %v733_v31  ;;  %v719_v34 = vsub.f32 %v3242_v59, %v692_v33 }
 0x249   : > { %v694_v35 = vpop.xlane.xlu1 %693  ;;  %2531 = vpow2.f32 %v737_v32 }
 0x24a   : > { %v739_v36 = vmul.f32 1.442695, %v719_v34  ;;  %v720_v37 = vsub.f32 %v3248_v63, %v694_v35 }
 0x24b   : > { %v696_v38 = vpop.xlane.xlu0 %695 }
 0x24c   : > { %2533 = vpow2.f32 %v739_v36  ;;  %v741_v39 = vmul.f32 1.442695, %v720_v37  ;;  %v721_v40 = vsub.f32 %v3245_v62, %v696_v38 }
 0x24d   : > { %v698_v41 = vpop.xlane.xlu1 %697 }
 0x24e   : > { %v3298_v42 = vpop.eup %2525  ;;  %v743_v43 = vmul.f32 1.442695, %v721_v40  ;;  %v722_v44 = vsub.f32 %v3252_v0, %v698_v41  ;;  %2535 = vpow2.f32 %v741_v39 }
 0x24f   : > { %763 = vadd.xlane.f32.xlu0 %v3298_v42  ;;  %v700_v45 = vpop.xlane.xlu0 %699  ;;  %v3303_v49 = vpop.eup %2527 }
 0x250   : > { %2537 = vpow2.f32 %v743_v43  ;;  %v745_v46 = vmul.f32 1.442695, %v722_v44  ;;  %v723_v47 = vsub.f32 %v3257_v3, %v700_v45 }
 0x251   : > { %v702_v50 = vpop.xlane.xlu1 %701 }
 0x252   : > { %v3305_v51 = vpop.eup %2529  ;;  %v747_v52 = vmul.f32 1.442695, %v723_v47  ;;  %v724_v53 = vsub.f32 %v3264_v7, %v702_v50  ;;  %2539 = vpow2.f32 %v745_v46 }
 0x253   : > { %767 = vadd.xlane.f32.xlu0 %v3303_v49  ;;  %765 = vadd.xlane.f32.xlu1 %v3305_v51  ;;  %v704_v54 = vpop.xlane.xlu0 %703  ;;  %v3311_v57 = vpop.eup %2531 }
 0x254   : > { %2541 = vpow2.f32 %v747_v52  ;;  %v749_v55 = vmul.f32 1.442695, %v724_v53  ;;  %v725_v56 = vsub.f32 %v3261_v6, %v704_v54 }
 0x255   : > { %v706_v58 = vpop.xlane.xlu1 %705 }
 0x256   : > { %v3313_v59 = vpop.eup %2533  ;;  %v751_v60 = vmul.f32 1.442695, %v725_v56  ;;  %v726_v61 = vsub.f32 %v3268_v8, %v706_v58  ;;  %2543 = vpow2.f32 %v749_v55 }
 0x257   : > { %769 = vadd.xlane.f32.xlu1 %v3311_v57  ;;  %771 = vadd.xlane.f32.xlu0 %v3313_v59  ;;  %v708_v62 = vpop.xlane.xlu0 %707 }
 0x258   : > { %2545 = vpow2.f32 %v751_v60  ;;  %v753_v63 = vmul.f32 1.442695, %v726_v61  ;;  %v727_v0 = vsub.f32 %v3273_v11, %v708_v62  ;;  %v3319_v1 = vpop.eup %2535 }
 0x259   : > { %v710_v2 = vpop.xlane.xlu1 %709 }
 0x25a   : > { %v3321_v3 = vpop.eup %2537  ;;  %v755_v4 = vmul.f32 1.442695, %v727_v0  ;;  %v728_v5 = vsub.f32 %v3280_v15, %v710_v2  ;;  %2547 = vpow2.f32 %v753_v63 }
 0x25b   : > { %773 = vadd.xlane.f32.xlu1 %v3319_v1  ;;  %775 = vadd.xlane.f32.xlu0 %v3321_v3  ;;  %v712_v6 = vpop.xlane.xlu0 %711 }
 0x25c   : > { %2549 = vpow2.f32 %v755_v4  ;;  %v757_v7 = vmul.f32 1.442695, %v728_v5  ;;  %v729_v8 = vsub.f32 %v3277_v14, %v712_v6  ;;  %v3328_v10 = vpop.eup %2539 }
 0x25d   : > { %v714_v11 = vpop.xlane.xlu1 %713 }
 0x25e   : > { %v3330_v12 = vpop.eup %2541  ;;  %v759_v13 = vmul.f32 1.442695, %v729_v8  ;;  %v730_v15 = vsub.f32 %v3284_v16, %v714_v11  ;;  %2551 = vpow2.f32 %v757_v7 }
 0x25f   : > { %777 = vadd.xlane.f32.xlu1 %v3328_v10  ;;  %779 = vadd.xlane.f32.xlu0 %v3330_v12 }
 0x260   : > { %2553 = vpow2.f32 %v759_v13  ;;  %v761_v17 = vmul.f32 1.442695, %v730_v15  ;;  %v3335_v14 = vpop.eup %2543  ;;  %v1068_v15 = vld [vmem:[%s3180_s11 + $0x4] sm:$0xf] }
 0x262   : > { %v3338_v19 = vpop.eup %2545  ;;  %2555 = vpow2.f32 %v761_v17  ;;  %v1069_v17 = vld [vmem:[%s3180_s11 + $0xc] sm:$0xf] }
 0x263   : > { %781 = vadd.xlane.f32.xlu1 %v3335_v14  ;;  %783 = vadd.xlane.f32.xlu0 %v3338_v19 }
 0x264   : > { %v3342_v16 = vpop.eup %2547 }
 0x266   : > { %v3345_v21 = vpop.eup %2549 }
 0x267   : > { %785 = vadd.xlane.f32.xlu1 %v3342_v16  ;;  %787 = vadd.xlane.f32.xlu0 %v3345_v21 }
 0x268   : > { %v3349_v22 = vpop.eup %2551 }
 0x26a   : > { %v3352_v24 = vpop.eup %2553 }
 0x26b   : > { %789 = vadd.xlane.f32.xlu1 %v3349_v22  ;;  %791 = vadd.xlane.f32.xlu0 %v3352_v24 }
 0x26c   : > { %v3356_v25 = vpop.eup %2555 }
 0x26f   : > { %793 = vadd.xlane.f32.xlu1 %v3356_v25 }
 0x2dc   : > { %v764_v27 = vpop.xlane.xlu0 %763 }
 0x2dd   : > { %2557 = vrcp.f32 %v764_v27 }
 0x2e0   : > { %v766_v28 = vpop.xlane.xlu1 %765  ;;  %v768_v29 = vpop.xlane.xlu0 %767 }
 0x2e1   : > { %2559 = vrcp.f32 %v766_v28 }
 0x2e2   : > { %2561 = vrcp.f32 %v768_v29 }
 0x2e4   : > { %v770_v30 = vpop.xlane.xlu1 %769  ;;  %v772_v31 = vpop.xlane.xlu0 %771 }
 0x2e5   : > { %2563 = vrcp.f32 %v770_v30 }
 0x2e6   : > { %2565 = vrcp.f32 %v772_v31  ;;  %v2514_v31 = vld [vmem:[%s3188_s14 + $0x54] ss:$8 sps:$4 sm:$0xff]  }
 0x2e7   : > { %v2558_v34 = vpop.eup %2557 }
 0x2e8   : > { %v774_v32 = vpop.xlane.xlu1 %773  ;;  %v776_v33 = vpop.xlane.xlu0 %775  ;;  %v811_v38 = vmul.f32 %v2558_v34, %v3298_v42  ;;  %v1072_v34 = vld [vmem:[%s3180_s11 + $0x24] sm:$0xf] }
 0x2e9   : > { %2567 = vrcp.f32 %v774_v32  ;;  %v2515_v32 = vld [vmem:[%s3188_s14 + $0x64] ss:$8 sps:$4 sm:$0xff]  }
 0x2ea   : > { %2569 = vrcp.f32 %v776_v33  ;;  %v1071_v33 = vld [vmem:[%s3180_s11 + $0x1c] sm:$0xf] }
 0x2eb   : > { %v2560_v35 = vpop.eup %2559 }
 0x2ec   : > { %v778_v36 = vpop.xlane.xlu1 %777  ;;  %v780_v37 = vpop.xlane.xlu0 %779  ;;  %v812_v39 = vmul.f32 %v2560_v35, %v3305_v51  ;;  %v2510_v51 = vld [vmem:[%s3188_s14 + $0x14] ss:$8 sps:$4 sm:$0xff]   ;;  %v1073_v35 = vld [vmem:[%s3180_s11 + $0x2c] sm:$0xf] }
 0x2ed   : > { %v2562_v40 = vpop.eup %2561  ;;  %2571 = vrcp.f32 %v778_v36 }
 0x2ee   : > { %v827_v41 = vpack.c.bf16 %v812_v39, %v811_v38  ;;  %2573 = vrcp.f32 %v780_v37  ;;  %v813_v46 = vmul.f32 %v2562_v40, %v3303_v49  ;;  %v1087_v37 = vmul.bf16 1035287989, %v1071_v33 }
 0x2ef   : > { %v2564_v43 = vpop.eup %2563  ;;  %v1088_v38 = vmul.bf16 1035287989, %v1072_v34  ;;  %v1089_v39 = vmul.bf16 1035287989, %v1073_v35 }
 0x2f0   : > { %v782_v44 = vpop.xlane.xlu1 %781  ;;  %2122 = vst [vmem:[%s3363_s24] sm:$0xff] %v827_v41   ;;  %2325 = vmatprep.mubr.bf16.mxu1 %v827_v41  ;;  %v784_v45 = vpop.xlane.xlu0 %783  ;;  %v814_v42 = vmul.f32 %v2564_v43, %v3311_v57  ;;  %v1074_v43 = vld [vmem:[%s3180_s11 + $0x34] sm:$0xf] }
 0x2f1   : > { %v2566_v47 = vpop.eup %2565  ;;  %2575 = vrcp.f32 %v782_v44  ;;  %v2019_v41 = vcombine.low %v1088_v38, %v1089_v39  ;;  %v1075_v44 = vld [vmem:[%s3180_s11 + $0x3c] sm:$0xf] }
 0x2f2   : > { %v828_v50 = vpack.c.bf16 %v814_v42, %v813_v46  ;;  %2577 = vrcp.f32 %v784_v45  ;;  %v815_v55 = vmul.f32 %v2566_v47, %v3313_v59  ;;  %v1076_v45 = vld [vmem:[%s3180_s11 + $0x44] sm:$0xf]  ;;  %v1077_v46 = vld [vmem:[%s3180_s11 + $0x4c] sm:$0xf]  ;;  %v1090_v42 = vmul.bf16 1035287989, %v1074_v43 }
 0x2f3   : > { %v2568_v52 = vpop.eup %2567  ;;  %v1091_v47 = vmul.bf16 1035287989, %v1075_v44 }
 0x2f4   : > { %v786_v53 = vpop.xlane.xlu1 %785  ;;  %2198 = vst [vmem:[%s3363_s24 + $0x8] sm:$0xff] %v828_v50   ;;  %2326 = vmatmul.mubr.bf16.vlgmr.msra.gmra.mrb[0].mxu1 %v828_v50  ;;  %v788_v54 = vpop.xlane.xlu0 %787  ;;  %v816_v56 = vmul.f32 %v2568_v52, %v3319_v1  ;;  %v2511_v1 = vld [vmem:[%s3188_s14 + $0x24] ss:$8 sps:$4 sm:$0xff]   ;;  %v1092_v50 = vmul.bf16 1035287989, %v1076_v45 }
 0x2f5   : > { %v2570_v58 = vpop.eup %2569  ;;  %2579 = vrcp.f32 %v786_v53  ;;  %2342 = vmatpush3.bf16.xpose.msra.mxu1 %v2509_v26  ;;  %v1085_v26 = vmul.bf16 1035287989, %v1069_v17  ;;  %v2020_v52 = vcombine.low %v1090_v42, %v1091_v47 }
 0x2f6   : > { %v829_v49 = vpack.c.bf16 %v816_v56, %v815_v55  ;;  %2343 = vmatprep.subr.bf16.mxu1 %v2510_v51  ;;  %2581 = vrcp.f32 %v788_v54  ;;  %v817_v62 = vmul.f32 %v2570_v58, %v3321_v3  ;;  %v1078_v54 = vld [vmem:[%s3180_s11 + $0x54] sm:$0xf]  ;;  %v1079_v55 = vld [vmem:[%s3180_s11 + $0x5c] sm:$0xf]  ;;  %v1080_v56 = vld [vmem:[%s3180_s11 + $0x64] sm:$0xf] }
 0x2f7   : > { %v2572_v57 = vpop.eup %2571  ;;  %v1081_v58 = vld [vmem:[%s3180_s11 + $0x6c] sm:$0xf] }
 0x2f8   : > { %v790_v60 = vpop.xlane.xlu1 %789  ;;  %2199 = vst [vmem:[%s3363_s24 + $0x10] sm:$0xff] %v829_v49   ;;  %2329 = vmatprep.mubr.bf16.mxu1 %v829_v49  ;;  %v792_v61 = vpop.xlane.xlu0 %791  ;;  %v818_v63 = vmul.f32 %v2572_v57, %v3328_v10  ;;  %v1094_v49 = vmul.bf16 1035287989, %v1078_v54  ;;  %v1095_v57 = vmul.bf16 1035287989, %v1079_v55 }
 0x2f9   : > { %v2574_v59 = vpop.eup %2573  ;;  %2583 = vrcp.f32 %v790_v60  ;;  %v1096_v60 = vmul.bf16 1035287989, %v1080_v56  ;;  %v2517_v54 = vld [vmem:[%s3195_s26 + $0x4] ss:$8 sps:$4 sm:$0xff]   ;;  %v2518_v55 = vld [vmem:[%s3195_s26 + $0x14] ss:$8 sps:$4 sm:$0xff]  }
 0x2fa   : > { %v830_v0 = vpack.c.bf16 %v818_v63, %v817_v62  ;;  %2585 = vrcp.f32 %v792_v61  ;;  %v819_v5 = vmul.f32 %v2574_v59, %v3330_v12  ;;  %v2512_v12 = vld [vmem:[%s3188_s14 + $0x34] ss:$8 sps:$4 sm:$0xff]   ;;  %v1097_v61 = vmul.bf16 1035287989, %v1081_v58  ;;  %2373 = vmatprep.subr.bf16.mxu0 %v2517_v54  ;;  %v2519_v56 = vld [vmem:[%s3195_s26 + $0x24] ss:$8 sps:$4 sm:$0xff]  }
 0x2fb   : > { %v2576_v2 = vpop.eup %2575  ;;  %v2022_v62 = vcombine.low %v1094_v49, %v1095_v57  ;;  %v1082_v59 = vld [vmem:[%s3180_s11 + $0x74] sm:$0xf]  ;;  %2374 = vmatpush3.bf16.msra.mxu0 %v2517_v54 }
 0x2fc   : > { %v794_v4 = vpop.xlane.xlu1 %793  ;;  %2200 = vst [vmem:[%s3363_s24 + $0x18] sm:$0xff] %v830_v0   ;;  %2330 = vmatmul.mubr.bf16.gmra.mrb[4].mxu1 %v830_v0  ;;  %v820_v6 = vmul.f32 %v2576_v2, %v3335_v14  ;;  %v2578_v3 = vpop.eup %2577  ;;  %v2023_v63 = vcombine.low %v1096_v60, %v1097_v61  ;;  %v1083_v0 = vld [vmem:[%s3180_s11 + $0x7c] sm:$0xf]  ;;  %2375 = vmatprep.subr.bf16.mxu0 %v2518_v55 }
 0x2fd   : > { %2587 = vrcp.f32 %v794_v4  ;;  %2344 = vmatpush3.bf16.xpose.msra.mxu1 %v2510_v51  ;;  %v821_v9 = vmul.f32 %v2578_v3, %v3338_v19  ;;  %v1084_v19 = vmul.bf16 1035287989, %v1068_v15  ;;  %v1093_v51 = vmul.bf16 1035287989, %v1077_v46 }
 0x2fe   : > { %v831_v7 = vpack.c.bf16 %v820_v6, %v819_v5  ;;  %2345 = vmatprep.subr.bf16.mxu1 %v2511_v1  ;;  %v1099_v2 = vmul.bf16 1035287989, %v1083_v0 }
 0x2ff   : > { %v2580_v8 = vpop.eup %2579  ;;  %v2021_v53 = vcombine.low %v1092_v50, %v1093_v51  ;;  %2376 = vmatpush3.bf16.msra.mxu0 %v2518_v55  ;;  %v2522_v55 = vld [vmem:[%s3195_s26 + $0x54] ss:$8 sps:$4 sm:$0xff]  }
 0x300   : > { %2201 = vst [vmem:[%s3363_s24 + $0x20] sm:$0xff] %v831_v7   ;;  %2333 = vmatprep.mubr.bf16.mxu1 %v831_v7  ;;  %v822_v10 = vmul.f32 %v2580_v8, %v3342_v16  ;;  %v2582_v11 = vpop.eup %2581  ;;  %2377 = vmatprep.subr.bf16.mxu0 %v2519_v56 }
 0x301   : > { %v823_v18 = vmul.f32 %v2582_v11, %v3345_v21  ;;  %v2017_v21 = vcombine.low %v1084_v19, %v1085_v26 }
 0x302   : > { %v832_v13 = vpack.c.bf16 %v822_v10, %v821_v9 }
 0x303   : > { %v2584_v14 = vpop.eup %2583  ;;  %2378 = vmatpush3.bf16.msra.mxu0 %v2519_v56 }
 0x304   : > { %2202 = vst [vmem:[%s3363_s24 + $0x28] sm:$0xff] %v832_v13   ;;  %2334 = vmatmul.mubr.bf16.gmra.mrb[8].mxu1 %v832_v13  ;;  %v824_v20 = vmul.f32 %v2584_v14, %v3349_v22  ;;  %v2586_v23 = vpop.eup %2585  ;;  %v2513_v22 = vld [vmem:[%s3188_s14 + $0x44] ss:$8 sps:$4 sm:$0xff]  }
 0x305   : > { %2346 = vmatpush3.bf16.xpose.msra.mxu1 %v2511_v1  ;;  %v825_v28 = vmul.f32 %v2586_v23, %v3352_v24  ;;  %v2516_v24 = vld [vmem:[%s3188_s14 + $0x74] ss:$8 sps:$4 sm:$0xff]   ;;  %v1098_v1 = vmul.bf16 1035287989, %v1082_v59 }
 0x306   : > { %v833_v16 = vpack.c.bf16 %v824_v20, %v823_v18  ;;  %2347 = vmatprep.subr.bf16.mxu1 %v2512_v12 }
 0x307   : > { %v2588_v27 = vpop.eup %2587  ;;  %v2024_v4 = vcombine.low %v1098_v1, %v1099_v2 }
 0x308   : > { %2203 = vst [vmem:[%s3363_s24 + $0x30] sm:$0xff] %v833_v16   ;;  %2337 = vmatprep.mubr.bf16.mxu1 %v833_v16  ;;  %v826_v29 = vmul.f32 %v2588_v27, %v3356_v25  ;;  %v1070_v25 = vld [vmem:[%s3180_s11 + $0x14] sm:$0xf] }
 0x309   : > { %v1086_v36 = vmul.bf16 1035287989, %v1070_v25 }
 0x30a   : > { %v834_v30 = vpack.c.bf16 %v826_v29, %v825_v28 }
 0x30b   : > { %v2018_v40 = vcombine.low %v1086_v36, %v1087_v37 }
 0x30c   : > { %2204 = vst [vmem:[%s3363_s24 + $0x38] sm:$0xff] %v834_v30   ;;  %2338 = vmatmul.mubr.bf16.gmra.mrb[12].mxu1 %v834_v30 }
 0x30d   : > { %2348 = vmatpush3.bf16.xpose.msra.mxu1 %v2512_v12  ;;  %2357 = vmatprep.mubr.bf16.mxu1 %v2017_v21 }
 0x30e   : > { %2349 = vmatprep.subr.bf16.mxu1 %v2513_v22 }
 0x315   : > { %2350 = vmatpush3.bf16.xpose.msra.mxu1 %v2513_v22 }
 0x316   : > { %2351 = vmatprep.subr.bf16.mxu1 %v2514_v31 }
 0x31d   : > { %2352 = vmatpush3.bf16.xpose.msra.mxu1 %v2514_v31 }
 0x31e   : > { %2353 = vmatprep.subr.bf16.mxu1 %v2515_v32 }
 0x325   : > { %2354 = vmatpush3.bf16.xpose.msra.mxu1 %v2515_v32 }
 0x326   : > { %2355 = vmatprep.subr.bf16.mxu1 %v2516_v24 }
 0x32d   : > { %2356 = vmatpush3.bf16.xpose.msra.mxu1 %v2516_v24 }
 0x334   : > { %2358 = vmatmul.mubr.bf16.vlgmr.msra.gmra.mrb[16].mxu1 %v2018_v40 }
 0x335   : > { %2361 = vmatprep.mubr.bf16.mxu1 %v2019_v41 }
 0x33c   : > { %2362 = vmatmul.mubr.bf16.gmra.mrb[20].mxu1 %v2020_v52 }
 0x33d   : > { %2365 = vmatprep.mubr.bf16.mxu1 %v2021_v53 }
 0x344   : > { %2366 = vmatmul.mubr.bf16.gmra.mrb[24].mxu1 %v2022_v62 }
 0x345   : > { %2369 = vmatprep.mubr.bf16.mxu1 %v2023_v63 }
 0x34c   : > { %2370 = vmatmul.mubr.bf16.gmra.mrb[28].mxu1 %v2024_v4 }
 0x3c7   : > { %v2327_v5 = vpop.f32.mrb[0].mxu1 }
 0x3c8   : > { %1054 = vst [vmem:[%s3411_s1 + $0x20] sm:$0xff] %v2327_v5  ;;  %v989_v6 = vpop.f32.mrb[1].mxu1 }
 0x3c9   : > { %1052 = vst [vmem:[%s3411_s1] sm:$0xff] %v989_v6  ;;  %v2328_v3 = vpop.f32.mrb[2].mxu1 }
 0x3ca   : > { %1055 = vst [vmem:[%s3411_s1 + $0x30] sm:$0xff] %v2328_v3  ;;  %v992_v7 = vpop.f32.mrb[3].mxu1 }
 0x3cb   : > { %1053 = vst [vmem:[%s3411_s1 + $0x10] sm:$0xff] %v992_v7 }
 0x3cf   : > { %v2331_v8 = vpop.f32.mrb[4].mxu1 }
 0x3d0   : > { %1058 = vst [vmem:[%s3411_s1 + $0x60] sm:$0xff] %v2331_v8  ;;  %v1005_v9 = vpop.f32.mrb[5].mxu1 }
 0x3d1   : > { %1056 = vst [vmem:[%s3411_s1 + $0x40] sm:$0xff] %v1005_v9  ;;  %v2332_v10 = vpop.f32.mrb[6].mxu1 }
 0x3d2   : > { %1059 = vst [vmem:[%s3411_s1 + $0x70] sm:$0xff] %v2332_v10  ;;  %v1008_v11 = vpop.f32.mrb[7].mxu1 }
 0x3d3   : > { %1057 = vst [vmem:[%s3411_s1 + $0x50] sm:$0xff] %v1008_v11 }
 0x3d7   : > { %v2335_v13 = vpop.f32.mrb[8].mxu1 }
 0x3d8   : > { %1062 = vst [vmem:[%s3411_s1 + $0xa0] sm:$0xff] %v2335_v13  ;;  %v1021_v12 = vpop.f32.mrb[9].mxu1 }
 0x3d9   : > { %1060 = vst [vmem:[%s3411_s1 + $0x80] sm:$0xff] %v1021_v12  ;;  %v2336_v15 = vpop.f32.mrb[10].mxu1 }
 0x3da   : > { %1063 = vst [vmem:[%s3411_s1 + $0xb0] sm:$0xff] %v2336_v15  ;;  %v1024_v17 = vpop.f32.mrb[11].mxu1 }
 0x3db   : > { %1061 = vst [vmem:[%s3411_s1 + $0x90] sm:$0xff] %v1024_v17 }
 0x3df   : > { %v2339_v14 = vpop.f32.mrb[12].mxu1 }
 0x3e0   : > { %1066 = vst [vmem:[%s3411_s1 + $0xe0] sm:$0xff] %v2339_v14  ;;  %v1037_v18 = vpop.f32.mrb[13].mxu1 }
 0x3e1   : > { %1064 = vst [vmem:[%s3411_s1 + $0xc0] sm:$0xff] %v1037_v18  ;;  %v2340_v20 = vpop.f32.mrb[14].mxu1 }
 0x3e2   : > { %1067 = vst [vmem:[%s3411_s1 + $0xf0] sm:$0xff] %v2340_v20  ;;  %v1040_v23 = vpop.f32.mrb[15].mxu1 }
 0x3e3   : > { %1065 = vst [vmem:[%s3411_s1 + $0xd0] sm:$0xff] %v1040_v23 }
 0x407   : > { %v2359_v19 = vpop.f32.mrb[16].mxu1 }
 0x408   : > { %v1262_v26 = vpop.f32.mrb[17].mxu1  ;;  %v1271_v21 = vadd.f32 %v2359_v19, %v3229_v48 }
 0x409   : > { %v1263_v16 = vadd.f32 %v3229_v48, %v1262_v26  ;;  %v2360_v27 = vpop.f32.mrb[18].mxu1 }
 0x40a   : > { %v1265_v28 = vpop.f32.mrb[19].mxu1  ;;  %v3433_v30 = vadd.f32 %v2360_v27, %v3229_v48 }
 0x40b   : > { %v1266_v29 = vadd.f32 %v3229_v48, %v1265_v28  ;;  %1325 = vmax.xlane.f32.xlu0 %v1263_v16 }
 0x40d   : > { %1327 = vmax.xlane.f32.xlu1 %v1266_v29 }
 0x40f   : > { %v2363_v22 = vpop.f32.mrb[20].mxu1  ;;  %1329 = vmax.xlane.f32.xlu0 %v1271_v21 }
 0x410   : > { %v1278_v31 = vpop.f32.mrb[21].mxu1  ;;  %v3444_v34 = vadd.f32 %v2363_v22, %v3229_v48 }
 0x411   : > { %v3436_v32 = vadd.f32 %v3229_v48, %v1278_v31  ;;  %v2364_v24 = vpop.f32.mrb[22].mxu1  ;;  %1331 = vmax.xlane.f32.xlu1 %v3433_v30 }
 0x412   : > { %v1281_v25 = vpop.f32.mrb[23].mxu1  ;;  %v3448_v35 = vadd.f32 %v2364_v24, %v3229_v48 }
 0x413   : > { %v3440_v33 = vadd.f32 %v3229_v48, %v1281_v25  ;;  %1333 = vmax.xlane.f32.xlu0 %v3436_v32 }
 0x415   : > { %1335 = vmax.xlane.f32.xlu1 %v3440_v33 }
 0x417   : > { %v2367_v36 = vpop.f32.mrb[24].mxu1  ;;  %1337 = vmax.xlane.f32.xlu0 %v3444_v34 }
 0x418   : > { %v1294_v37 = vpop.f32.mrb[25].mxu1  ;;  %v3460_v43 = vadd.f32 %v2367_v36, %v3229_v48 }
 0x419   : > { %v3452_v38 = vadd.f32 %v3229_v48, %v1294_v37  ;;  %v2368_v39 = vpop.f32.mrb[26].mxu1  ;;  %1339 = vmax.xlane.f32.xlu1 %v3448_v35 }
 0x41a   : > { %v1297_v40 = vpop.f32.mrb[27].mxu1  ;;  %v3464_v44 = vadd.f32 %v2368_v39, %v3229_v48 }
 0x41b   : > { %v3456_v41 = vadd.f32 %v3229_v48, %v1297_v40  ;;  %1341 = vmax.xlane.f32.xlu0 %v3452_v38 }
 0x41d   : > { %1343 = vmax.xlane.f32.xlu1 %v3456_v41 }
 0x41f   : > { %v2371_v45 = vpop.f32.mrb[28].mxu1  ;;  %1345 = vmax.xlane.f32.xlu0 %v3460_v43 }
 0x420   : > { %v1310_v46 = vpop.f32.mrb[29].mxu1  ;;  %v3476_v52 = vadd.f32 %v2371_v45, %v3229_v48 }
 0x421   : > { %v3468_v42 = vadd.f32 %v3229_v48, %v1310_v46  ;;  %v2372_v47 = vpop.f32.mrb[30].mxu1  ;;  %1347 = vmax.xlane.f32.xlu1 %v3464_v44 }
 0x422   : > { %v1313_v50 = vpop.f32.mrb[31].mxu1  ;;  %v3480_v53 = vadd.f32 %v2372_v47, %v3229_v48 }
 0x423   : > { %v3472_v51 = vadd.f32 %v3229_v48, %v1313_v50  ;;  %1349 = vmax.xlane.f32.xlu0 %v3468_v42 }
 0x425   : > { %1351 = vmax.xlane.f32.xlu1 %v3472_v51 }
 0x427   : > { %1353 = vmax.xlane.f32.xlu0 %v3476_v52 }
 0x429   : > { %1355 = vmax.xlane.f32.xlu1 %v3480_v53 }
 0x498   : > { %v1326_v58 = vpop.xlane.xlu0 %1325 }
 0x499   : > { %v1357_v49 = vsub.f32 %v1263_v16, %v1326_v58 }
 0x49a   : > { %v1328_v57 = vpop.xlane.xlu1 %1327 }
 0x49b   : > { %v1373_v60 = vmul.f32 1.442695, %v1357_v49  ;;  %v1358_v61 = vsub.f32 %v1266_v29, %v1328_v57  ;;  %v2523_v49 = vld [vmem:[%s3195_s26 + $0x64] ss:$8 sps:$4 sm:$0xff]  }
 0x49c   : > { %v1330_v48 = vpop.xlane.xlu0 %1329 }
 0x49d   : > { %2589 = vpow2.f32 %v1373_v60  ;;  %v1375_v62 = vmul.f32 1.442695, %v1358_v61  ;;  %v1359_v63 = vsub.f32 %v1271_v21, %v1330_v48  ;;  %v2524_v61 = vld [vmem:[%s3195_s26 + $0x74] ss:$8 sps:$4 sm:$0xff]  }
 0x49e   : > { %v1332_v59 = vpop.xlane.xlu1 %1331 }
 0x49f   : > { %2591 = vpow2.f32 %v1375_v62  ;;  %v1377_v0 = vmul.f32 1.442695, %v1359_v63  ;;  %v1360_v1 = vsub.f32 %v3433_v30, %v1332_v59 }
 0x4a0   : > { %v1334_v2 = vpop.xlane.xlu0 %1333 }
 0x4a1   : > { %2593 = vpow2.f32 %v1377_v0  ;;  %v1379_v4 = vmul.f32 1.442695, %v1360_v1  ;;  %v1361_v5 = vsub.f32 %v3436_v32, %v1334_v2 }
 0x4a2   : > { %v1336_v6 = vpop.xlane.xlu1 %1335 }
 0x4a3   : > { %2595 = vpow2.f32 %v1379_v4  ;;  %v1381_v3 = vmul.f32 1.442695, %v1361_v5  ;;  %v1362_v7 = vsub.f32 %v3440_v33, %v1336_v6 }
 0x4a4   : > { %v1338_v8 = vpop.xlane.xlu0 %1337 }
 0x4a5   : > { %2597 = vpow2.f32 %v1381_v3  ;;  %v1383_v9 = vmul.f32 1.442695, %v1362_v7  ;;  %v1363_v10 = vsub.f32 %v3444_v34, %v1338_v8 }
 0x4a6   : > { %v1340_v11 = vpop.xlane.xlu1 %1339 }
 0x4a7   : > { %v3491_v13 = vpop.eup %2589  ;;  %2599 = vpow2.f32 %v1383_v9  ;;  %v1385_v12 = vmul.f32 1.442695, %v1363_v10  ;;  %v1364_v15 = vsub.f32 %v3448_v35, %v1340_v11 }
 0x4a8   : > { %1405 = vadd.xlane.f32.xlu0 %v3491_v13  ;;  %v1342_v17 = vpop.xlane.xlu0 %1341 }
 0x4a9   : > { %v3495_v14 = vpop.eup %2591  ;;  %2601 = vpow2.f32 %v1385_v12  ;;  %v1387_v18 = vmul.f32 1.442695, %v1364_v15  ;;  %v1365_v20 = vsub.f32 %v3452_v38, %v1342_v17 }
 0x4aa   : > { %1407 = vadd.xlane.f32.xlu1 %v3495_v14  ;;  %v1344_v23 = vpop.xlane.xlu1 %1343 }
 0x4ab   : > { %v3499_v19 = vpop.eup %2593  ;;  %2603 = vpow2.f32 %v1387_v18  ;;  %v1389_v26 = vmul.f32 1.442695, %v1365_v20  ;;  %v1366_v16 = vsub.f32 %v3456_v41, %v1344_v23 }
 0x4ac   : > { %1409 = vadd.xlane.f32.xlu0 %v3499_v19  ;;  %v1346_v27 = vpop.xlane.xlu0 %1345 }
 0x4ad   : > { %v3503_v28 = vpop.eup %2595  ;;  %2605 = vpow2.f32 %v1389_v26  ;;  %v1391_v29 = vmul.f32 1.442695, %v1366_v16  ;;  %v1367_v21 = vsub.f32 %v3460_v43, %v1346_v27 }
 0x4ae   : > { %1411 = vadd.xlane.f32.xlu1 %v3503_v28  ;;  %v1348_v30 = vpop.xlane.xlu1 %1347 }
 0x4af   : > { %v3507_v22 = vpop.eup %2597  ;;  %2607 = vpow2.f32 %v1391_v29  ;;  %v1393_v31 = vmul.f32 1.442695, %v1367_v21  ;;  %v1368_v32 = vsub.f32 %v3464_v44, %v1348_v30  ;;  %v2520_v44 = vld [vmem:[%s3195_s26 + $0x34] ss:$8 sps:$4 sm:$0xff]  }
 0x4b0   : > { %1413 = vadd.xlane.f32.xlu0 %v3507_v22  ;;  %v1350_v24 = vpop.xlane.xlu0 %1349  ;;  %2379 = vmatprep.subr.bf16.mxu0 %v2520_v44 }
 0x4b1   : > { %v3511_v25 = vpop.eup %2599  ;;  %2609 = vpow2.f32 %v1393_v31  ;;  %v1395_v33 = vmul.f32 1.442695, %v1368_v32  ;;  %v1369_v34 = vsub.f32 %v3468_v42, %v1350_v24  ;;  %2380 = vmatpush3.bf16.msra.mxu0 %v2520_v44 }
 0x4b2   : > { %1415 = vadd.xlane.f32.xlu1 %v3511_v25  ;;  %v1352_v35 = vpop.xlane.xlu1 %1351 }
 0x4b3   : > { %v3515_v36 = vpop.eup %2601  ;;  %2611 = vpow2.f32 %v1395_v33  ;;  %v1397_v37 = vmul.f32 1.442695, %v1369_v34  ;;  %v1370_v38 = vsub.f32 %v3472_v51, %v1352_v35 }
 0x4b4   : > { %1417 = vadd.xlane.f32.xlu0 %v3515_v36  ;;  %v1354_v39 = vpop.xlane.xlu0 %1353 }
 0x4b5   : > { %v3519_v40 = vpop.eup %2603  ;;  %2613 = vpow2.f32 %v1397_v37  ;;  %v1399_v41 = vmul.f32 1.442695, %v1370_v38  ;;  %v1371_v43 = vsub.f32 %v3476_v52, %v1354_v39  ;;  %v2521_v52 = vld [vmem:[%s3195_s26 + $0x44] ss:$8 sps:$4 sm:$0xff]  }
 0x4b6   : > { %1419 = vadd.xlane.f32.xlu1 %v3519_v40  ;;  %v1356_v45 = vpop.xlane.xlu1 %1355  ;;  %2381 = vmatprep.subr.bf16.mxu0 %v2521_v52 }
 0x4b7   : > { %v3524_v46 = vpop.eup %2605  ;;  %2615 = vpow2.f32 %v1399_v41  ;;  %v1401_v42 = vmul.f32 1.442695, %v1371_v43  ;;  %v1372_v47 = vsub.f32 %v3480_v53, %v1356_v45  ;;  %2382 = vmatpush3.bf16.msra.mxu0 %v2521_v52 }
 0x4b8   : > { %1421 = vadd.xlane.f32.xlu0 %v3524_v46  ;;  %2383 = vmatprep.subr.bf16.mxu0 %v2522_v55 }
 0x4b9   : > { %v3528_v50 = vpop.eup %2607  ;;  %2617 = vpow2.f32 %v1401_v42  ;;  %v1403_v51 = vmul.f32 1.442695, %v1372_v47 }
 0x4ba   : > { %1423 = vadd.xlane.f32.xlu1 %v3528_v50 }
 0x4bb   : > { %v3532_v54 = vpop.eup %2609  ;;  %2619 = vpow2.f32 %v1403_v51  ;;  %2384 = vmatpush3.bf16.msra.mxu0 %v2522_v55 }
 0x4bc   : > { %1425 = vadd.xlane.f32.xlu0 %v3532_v54  ;;  %2385 = vmatprep.subr.bf16.mxu0 %v2523_v49 }
 0x4bd   : > { %v3535_v53 = vpop.eup %2611 }
 0x4be   : > { %1427 = vadd.xlane.f32.xlu1 %v3535_v53 }
 0x4bf   : > { %v3539_v56 = vpop.eup %2613  ;;  %2386 = vmatpush3.bf16.msra.mxu0 %v2523_v49 }
 0x4c0   : > { %1429 = vadd.xlane.f32.xlu0 %v3539_v56  ;;  %2387 = vmatprep.subr.bf16.mxu0 %v2524_v61 }
 0x4c1   : > { %v3542_v58 = vpop.eup %2615 }
 0x4c2   : > { %1431 = vadd.xlane.f32.xlu1 %v3542_v58 }
 0x4c3   : > { %v3546_v57 = vpop.eup %2617  ;;  %2388 = vmatpush3.bf16.msra.mxu0 %v2524_v61 }
 0x4c4   : > { %1433 = vadd.xlane.f32.xlu0 %v3546_v57 }
 0x4c5   : > { %v3549_v60 = vpop.eup %2619 }
 0x4c6   : > { %1435 = vadd.xlane.f32.xlu1 %v3549_v60 }
 0x535   : > { %v1406_v48 = vpop.xlane.xlu0 %1405 }
 0x536   : > { %2621 = vrcp.f32 %v1406_v48 }
 0x537   : > { %v1408_v62 = vpop.xlane.xlu1 %1407 }
 0x538   : > { %2623 = vrcp.f32 %v1408_v62 }
 0x539   : > { %v1410_v63 = vpop.xlane.xlu0 %1409 }
 0x53a   : > { %2625 = vrcp.f32 %v1410_v63 }
 0x53b   : > { %v1412_v59 = vpop.xlane.xlu1 %1411 }
 0x53c   : > { %2627 = vrcp.f32 %v1412_v59 }
 0x53d   : > { %v1414_v0 = vpop.xlane.xlu0 %1413 }
 0x53e   : > { %2629 = vrcp.f32 %v1414_v0 }
 0x53f   : > { %v1416_v1 = vpop.xlane.xlu1 %1415 }
 0x540   : > { %v2622_v2 = vpop.eup %2621  ;;  %2631 = vrcp.f32 %v1416_v1 }
 0x541   : > { %v1418_v4 = vpop.xlane.xlu0 %1417  ;;  %v1453_v3 = vmul.f32 %v2622_v2, %v3491_v13 }
 0x542   : > { %v2624_v5 = vpop.eup %2623  ;;  %2633 = vrcp.f32 %v1418_v4 }
 0x543   : > { %v1420_v6 = vpop.xlane.xlu1 %1419  ;;  %v1454_v7 = vmul.f32 %v2624_v5, %v3495_v14 }
 0x544   : > { %v2626_v8 = vpop.eup %2625  ;;  %2635 = vrcp.f32 %v1420_v6 }
 0x545   : > { %v1422_v9 = vpop.xlane.xlu0 %1421  ;;  %v1469_v10 = vpack.c.bf16 %v1454_v7, %v1453_v3  ;;  %v1455_v12 = vmul.f32 %v2626_v8, %v3499_v19 }
 0x546   : > { %v2628_v11 = vpop.eup %2627  ;;  %2637 = vrcp.f32 %v1422_v9 }
 0x547   : > { %v1456_v15 = vmul.f32 %v2628_v11, %v3503_v28  ;;  %v1424_v17 = vpop.xlane.xlu1 %1423  ;;  %2205 = vst [vmem:[%s3363_s24 + $0x40] sm:$0xff] %v1469_v10   ;;  %2389 = vmatprep.mubr.bf16.mxu0 %v1469_v10 }
 0x548   : > { %v2630_v18 = vpop.eup %2629  ;;  %2639 = vrcp.f32 %v1424_v17 }
 0x549   : > { %v1426_v20 = vpop.xlane.xlu0 %1425  ;;  %v1470_v13 = vpack.c.bf16 %v1456_v15, %v1455_v12  ;;  %v1457_v26 = vmul.f32 %v2630_v18, %v3507_v22 }
 0x54a   : > { %v2632_v14 = vpop.eup %2631  ;;  %2641 = vrcp.f32 %v1426_v20 }
 0x54b   : > { %v1428_v23 = vpop.xlane.xlu1 %1427  ;;  %2206 = vst [vmem:[%s3363_s24 + $0x48] sm:$0xff] %v1470_v13   ;;  %2390 = vmatmul.mubr.bf16.vlgmr.msra.gmra.mrb[16].mxu0 %v1470_v13  ;;  %v1458_v16 = vmul.f32 %v2632_v14, %v3511_v25 }
 0x54c   : > { %v2634_v19 = vpop.eup %2633  ;;  %2643 = vrcp.f32 %v1428_v23 }
 0x54d   : > { %v1430_v27 = vpop.xlane.xlu0 %1429  ;;  %v1471_v28 = vpack.c.bf16 %v1458_v16, %v1457_v26  ;;  %v1459_v30 = vmul.f32 %v2634_v19, %v3515_v36 }
 0x54e   : > { %v2636_v29 = vpop.eup %2635  ;;  %2645 = vrcp.f32 %v1430_v27 }
 0x54f   : > { %v1432_v21 = vpop.xlane.xlu1 %1431  ;;  %2207 = vst [vmem:[%s3363_s24 + $0x50] sm:$0xff] %v1471_v28   ;;  %2393 = vmatprep.mubr.bf16.mxu0 %v1471_v28  ;;  %v1460_v31 = vmul.f32 %v2636_v29, %v3519_v40 }
 0x550   : > { %v2638_v32 = vpop.eup %2637  ;;  %2647 = vrcp.f32 %v1432_v21 }
 0x551   : > { %v1434_v22 = vpop.xlane.xlu0 %1433  ;;  %v1472_v24 = vpack.c.bf16 %v1460_v31, %v1459_v30  ;;  %v1461_v34 = vmul.f32 %v2638_v32, %v3524_v46 }
 0x552   : > { %v2640_v25 = vpop.eup %2639  ;;  %2649 = vrcp.f32 %v1434_v22 }
 0x553   : > { %v1436_v33 = vpop.xlane.xlu1 %1435  ;;  %2208 = vst [vmem:[%s3363_s24 + $0x58] sm:$0xff] %v1472_v24   ;;  %2394 = vmatmul.mubr.bf16.gmra.mrb[20].mxu0 %v1472_v24  ;;  %v1462_v35 = vmul.f32 %v2640_v25, %v3528_v50 }
 0x554   : > { %v2642_v37 = vpop.eup %2641  ;;  %2651 = vrcp.f32 %v1436_v33 }
 0x555   : > { %v1473_v36 = vpack.c.bf16 %v1462_v35, %v1461_v34  ;;  %v1463_v39 = vmul.f32 %v2642_v37, %v3532_v54 }
 0x556   : > { %v2644_v38 = vpop.eup %2643 }
 0x557   : > { %2209 = vst [vmem:[%s3363_s24 + $0x60] sm:$0xff] %v1473_v36   ;;  %2397 = vmatprep.mubr.bf16.mxu0 %v1473_v36  ;;  %v1464_v40 = vmul.f32 %v2644_v38, %v3535_v53 }
 0x558   : > { %v2646_v41 = vpop.eup %2645 }
 0x559   : > { %v1474_v43 = vpack.c.bf16 %v1464_v40, %v1463_v39  ;;  %v1465_v45 = vmul.f32 %v2646_v41, %v3539_v56 }
 0x55a   : > { %v2648_v44 = vpop.eup %2647 }
 0x55b   : > { %2210 = vst [vmem:[%s3363_s24 + $0x68] sm:$0xff] %v1474_v43   ;;  %2398 = vmatmul.mubr.bf16.gmra.mrb[24].mxu0 %v1474_v43  ;;  %v1466_v46 = vmul.f32 %v2648_v44, %v3542_v58 }
 0x55c   : > { %v2650_v42 = vpop.eup %2649 }
 0x55d   : > { %v1475_v47 = vpack.c.bf16 %v1466_v46, %v1465_v45  ;;  %v1467_v51 = vmul.f32 %v2650_v42, %v3546_v57 }
 0x55e   : > { %v2652_v50 = vpop.eup %2651 }
 0x55f   : > { %2211 = vst [vmem:[%s3363_s24 + $0x70] sm:$0xff] %v1475_v47   ;;  %2401 = vmatprep.mubr.bf16.mxu0 %v1475_v47  ;;  %v1468_v52 = vmul.f32 %v2652_v50, %v3549_v60 }
 0x561   : > { %v1476_v54 = vpack.c.bf16 %v1468_v52, %v1467_v51 }
 0x563   : > { %2212 = vst [vmem:[%s3363_s24 + $0x78] sm:$0xff] %v1476_v54   ;;  %2402 = vmatmul.mubr.bf16.gmra.mrb[28].mxu0 %v1476_v54 }
 0x564   : > { %2786 = shalt.err (!%p2783_p7)
}
 0x565   : > { %s2787_s13 = scalar_lea.hbm %s3582_s25, 2048  ;;  %s2791_s17 = scalar_lea.hbm %s3687_s5, 4096 }
 0x566   : > { %p2788_p3 = scmp.ne.s32.totalorder %s3582_s25, %s2787_s13  ;;  %p2792_p12 = scmp.lt.u32.totalorder %s3582_s25, %s3687_s5 }
 0x567   : > { %p2793_p8 = scmp.lt.u32.totalorder %s2791_s17, %s2787_s13  ;;  %p2795_p4 = scmp.lt.u32.totalorder %s2787_s13, %s3582_s25 }
 0x568   : > { %p2789_p10 = pnand %p2788_p3, %p3723_p1 }
 0x569   : > { %p2794_p0 = por %p2793_p8, %p2792_p12 }
 0x56a   : > { %p2790_p9 = pneg %p2789_p10 }
 0x56b   : > { %p2796_p6 = por %p2795_p4, %p2794_p0 }
 0x56d   : > { %p2797_p13 = pnand %p2796_p6, %p2790_p9 }
 0x56f   : > { %2800 = shalt.err (!%p2797_p13)
}
 0x570   : > { %s2904_s16 = smov 64   ;;  %s2905_s18 = smov 4  }
 0x571   : > { %2414 = dma.vmem_to_hbm [thread:$0]  (%p3723_p1), %s3584_s7, 2048, %s3582_s25, %s1717_s9, %s2904_s16, %s2904_s16, %s2905_s18  }
 0x572   : > { %s2116_s24 = sshll.u32 %s2887_s21, 12  ;;  %s1735_s30 = sshll.u32 %s3411_s1, 4  ;;  %s3630_s30 = int_to_ptr.vmem [resolvable:$true] %s1735_s30 }
 0x573   : > { %s3628_s20 = scalar_lea.hbm %s3686_s4, %s2116_s24  ;;  %s1712_s21 = scalar_lea.sflag [#allocation4], %s3173_s29 }
 0x574   : > { %s2801_s23 = scalar_lea.vmem %s3630_s30, 4096  ;;  %s2906_s25 = smov [#allocation10]  }
 0x575   : > { %p2802_p11 = scmp.ne.s32.totalorder %s3630_s30, %s2801_s23  ;;  %s2805_s9 = sshll.u32 %s2906_s25, 4  ;;  %s2806_s9 = int_to_ptr.vmem [resolvable:$false] %s2805_s9 }
 0x576   : > { %s2807_s10 = scalar_lea.vmem %s2806_s9, 8192  ;;  %p2808_p7 = scmp.lt.s32.totalorder %s3630_s30, %s2806_s9 }
 0x577   : > { %p2803_p2 = pnand %p2802_p11, %p3723_p1  ;;  %p2809_p3 = scmp.lt.s32.totalorder %s2807_s10, %s2801_s23 }
 0x579   : > { %p2804_p5 = pneg %p2803_p2  ;;  %p2810_p10 = por %p2809_p3, %p2808_p7 }
 0x57b   : > { %p2811_p9 = pnand %p2810_p10, %p2804_p5 }
 0x61e   : > { %v2391_v53 = vpop.f32.mrb[16].mxu0 }
 0x61f   : > { %1697 = vst [vmem:[%s3411_s1 + $0x28] sm:$0xff] %v2391_v53  ;;  %v1632_v55 = vpop.f32.mrb[17].mxu0 }
 0x620   : > { %1695 = vst [vmem:[%s3411_s1 + $0x8] sm:$0xff] %v1632_v55  ;;  %v2392_v56 = vpop.f32.mrb[18].mxu0 }
 0x621   : > { %1698 = vst [vmem:[%s3411_s1 + $0x38] sm:$0xff] %v2392_v56  ;;  %v1635_v58 = vpop.f32.mrb[19].mxu0 }
 0x622   : > { %1696 = vst [vmem:[%s3411_s1 + $0x18] sm:$0xff] %v1635_v58 }
 0x626   : > { %v2395_v49 = vpop.f32.mrb[20].mxu0 }
 0x627   : > { %1701 = vst [vmem:[%s3411_s1 + $0x68] sm:$0xff] %v2395_v49  ;;  %v1648_v57 = vpop.f32.mrb[21].mxu0 }
 0x628   : > { %1699 = vst [vmem:[%s3411_s1 + $0x48] sm:$0xff] %v1648_v57  ;;  %v2396_v60 = vpop.f32.mrb[22].mxu0 }
 0x629   : > { %1702 = vst [vmem:[%s3411_s1 + $0x78] sm:$0xff] %v2396_v60  ;;  %v1651_v61 = vpop.f32.mrb[23].mxu0 }
 0x62a   : > { %1700 = vst [vmem:[%s3411_s1 + $0x58] sm:$0xff] %v1651_v61 }
 0x62e   : > { %v2399_v48 = vpop.f32.mrb[24].mxu0 }
 0x62f   : > { %1705 = vst [vmem:[%s3411_s1 + $0xa8] sm:$0xff] %v2399_v48  ;;  %v1664_v62 = vpop.f32.mrb[25].mxu0 }
 0x630   : > { %1703 = vst [vmem:[%s3411_s1 + $0x88] sm:$0xff] %v1664_v62  ;;  %v2400_v63 = vpop.f32.mrb[26].mxu0 }
 0x631   : > { %1706 = vst [vmem:[%s3411_s1 + $0xb8] sm:$0xff] %v2400_v63  ;;  %v1667_v59 = vpop.f32.mrb[27].mxu0 }
 0x632   : > { %1704 = vst [vmem:[%s3411_s1 + $0x98] sm:$0xff] %v1667_v59 }
 0x636   : > { %v2403_v0 = vpop.f32.mrb[28].mxu0 }
 0x637   : > { %1709 = vst [vmem:[%s3411_s1 + $0xe8] sm:$0xff] %v2403_v0  ;;  %v1680_v1 = vpop.f32.mrb[29].mxu0 }
 0x638   : > { %1707 = vst [vmem:[%s3411_s1 + $0xc8] sm:$0xff] %v1680_v1  ;;  %v2404_v2 = vpop.f32.mrb[30].mxu0 }
 0x639   : > { %1710 = vst [vmem:[%s3411_s1 + $0xf8] sm:$0xff] %v2404_v2  ;;  %v1683_v4 = vpop.f32.mrb[31].mxu0 }
 0x63a   : > { %1708 = vst [vmem:[%s3411_s1 + $0xd8] sm:$0xff] %v1683_v4 }
 0x63b   : > { %2814 = shalt.err (!%p2811_p9)
}
 0x63c   : > { %s2815_s1 = scalar_lea.hbm %s3628_s20, 4096  ;;  %s2819_s8 = scalar_lea.hbm %s3686_s4, 8192 }
 0x63d   : > { %p2816_p12 = scmp.ne.s32.totalorder %s3628_s20, %s2815_s1  ;;  %p2820_p4 = scmp.lt.u32.totalorder %s3628_s20, %s3686_s4 }
 0x63e   : > { %p2821_p6 = scmp.lt.u32.totalorder %s2819_s8, %s2815_s1  ;;  %p2823_p11 = scmp.lt.u32.totalorder %s2815_s1, %s3628_s20 }
 0x63f   : > { %p2817_p8 = pnand %p2816_p12, %p3723_p1 }
 0x640   : > { %p2822_p13 = por %p2821_p6, %p2820_p4 }
 0x641   : > { %p2818_p0 = pneg %p2817_p8 }
 0x642   : > { %p2824_p2 = por %p2823_p11, %p2822_p13 }
 0x644   : > { %p2825_p5 = pnand %p2824_p2, %p2818_p0 }
 0x646   : > { %2828 = shalt.err (!%p2825_p5)
}
 0x647   : > { %s2907_s12 = smov 256   ;;  %s2908_s17 = smov 16  }
 0x648   : > { %2413 = dma.vmem_to_hbm [thread:$0]  (%p3723_p1), %s3630_s30, 4096, %s3628_s20, %s1712_s21, %s2907_s12, %s2907_s12, %s2908_s17  }
 0x649 PF: > { %s3724_s14 = sld [smem:[#allocation18_spill]]  ;;  %s3725_s26 = sld [smem:[#allocation23_spill]] }
 0x64a   : > { %s3726_s16 = sld [smem:[#allocation20_spill]] }
 0x64f   : > { %s1771_s18 = sand.u32 1, %s3724_s14   ;;  %p3727_p7 = scmp.ne.s32.totalorder %s3725_s26, 0 }
 0x650   : > { %p3728_p3 = scmp.ge.s32.totalorder %s3726_s16, 2  ;;  %s1772_s24 = scalar_lea.sflag [#allocation4], %s1771_s18 }
 0x652   : > { %p2431_p10 = pnand %p3728_p3, %p3727_p7 }
 0x654   : > { %2866 = dma.done.wait (!%p2431_p10), %s1772_s24, 4096  }
 0x655   : > { %2868 = vsyncadd (!%p2431_p10), %s1772_s24, 4294963200  ;;  %s1781_s27 = scalar_lea.sflag [#allocation12], %s1771_s18 }
 0x656   : > { %2870 = dma.done.wait (!%p2431_p10), %s1781_s27, 2048  }
 0x657   : > { %2872 = vsyncadd (!%p2431_p10), %s1781_s27, 4294965248  ;;  %s31_s23 = sadd.s32 1, %s3726_s16   ;;  %s3729_s6 = sld [smem:[#allocation19_spill]] }
 0x658   : > { %p28_p9 = scmp.ge.s32.totalorder %s31_s23, 4   ;;  %s3730_s20 = sld [smem:[#allocation22_spill]] }
 0x659   : > { %s3731_s29 = sld [smem:[#allocation21_spill]]  ;;  %s3732_s18 = smov %s2879_s19 }
 0x65a   : > { %s3734_s21 = smov %s2891_s22  ;;  %30 = sbr.rel (!%p28_p9) target bundleno = 14 (0xe), region = 136 }
 0x65d   : > { %s3733_s19 = smov %s3729_s6 }
 0x65f   : > { %s3735_s22 = smov %s3731_s29 }
 0x661   :  { %1786 = vsyncpa [#allocation3], 1 }
 0x662   :  { %1788 = vsyncpa [#allocation3 + $0x1], 1 }
 0x663   :  { %1789 = vsyncpa [#allocation6], 1 }
 0x664   :  { %1791 = vsyncpa [#allocation6 + $0x1], 1 }
 0x665   :  { %1792 = vsyncpa [#allocation9], 1 }
 0x666   :  { %1794 = vsyncpa [#allocation9 + $0x1], 1 }
 0x667   :  { %1795 = vsyncpa [#allocation4], 1 }
 0x668   :  { %1797 = vsyncpa [#allocation4 + $0x1], 1 }
 0x669   :  { %1798 = vsyncpa [#allocation12], 1 }
 0x66a   :  { %1800 = vsyncpa [#allocation12 + $0x1], 1 }

</bundles_post_ra>
